<compile_context>
chip_gen: v5e
topology: v5e:2x2
jax: 0.10.0
libtpu: 0.0.40
codegen_flags: <defaults>
</compile_context>

<pallas_src>
import jax
import jax.numpy as jnp
from jax.experimental import pallas as pl
from jax.experimental.pallas import tpu as pltpu

IN_FEATURES = 784
HIDDEN = 512
OUT_FEATURES = 10
OUT_PAD = 128      # lane-dense output width (zero-padded w2 columns, masked to -inf)
TM_MAX = 512       # batch tile cap (multiple of 256 for v6e/v7x MXU, 128 for v5e)


def _round_up(n, m):
    return ((n + m - 1) // m) * m


def _choose_tile(B):
    """Pick the batch tile TM and padded batch B_pad.

    - multiples of 16 (bf16 sublane packing, v5e friendly)
    - large tiles (up to 512) so each grid step is well above the per-step
      pipeline overhead floor
    - >=2 grid steps when the batch allows it, so the "parallel" axis can shard
      across v7x's two TensorCores
    """
    if B <= 32:
        TM = _round_up(B, 16)
        return TM, TM
    half = -(-B // 2)  # cdiv(B, 2): aim for at least 2 grid steps
    if half <= 128:
        TM = _round_up(half, 16)
    else:
        TM = min(TM_MAX, _round_up(half, 128))
    B_pad = _round_up(B, TM)
    return TM, B_pad


def prepare_params(w1, w2):
    """One-time (model-load) weight preparation; reuse the results across calls.

    w1: [784, 512] f32 -> bf16 (halves the resident-weight HBM traffic; layer-1
        accumulation stays f32 on the MXU).
    w2: [512, 10] f32 -> zero-padded [512, 128] f32 (lane-dense logits/output).
    """
    w1_bf = w1.astype(jnp.bfloat16)
    w2_pad = jnp.zeros((HIDDEN, OUT_PAD), jnp.float32).at[:, :OUT_FEATURES].set(w2)
    return w1_bf, w2_pad


def mlp_kernel(x_ref, w1_ref, w2_ref, o_ref):
    # ---- layer 1: cast x f32->bf16 on the VPU, bf16 MXU matmul, f32 accumulation ----
    x_bf = x_ref[...].astype(jnp.bfloat16)
    h = jnp.dot(x_bf, w1_ref[...], preferred_element_type=jnp.float32)
    h = jnp.maximum(h, 0.0)

    # ---- layer 2: tiny f32 GEMM (keeps logit precision; ~1% of layer-1 FLOPs) ----
    logits = jnp.dot(h, w2_ref[...], preferred_element_type=jnp.float32)

    # ---- mask the zero-padded logit columns (>= 10) to -inf before the lse ----
    col = jax.lax.broadcasted_iota(jnp.int32, logits.shape, 1)
    logits = jnp.where(col < OUT_FEATURES, logits, -jnp.inf)

    # ---- numerically stable log_softmax over dim=1 (last dim), all f32 ----
    m = jnp.max(logits, axis=-1, keepdims=True)
    shifted = logits - m
    lse = jnp.log(jnp.sum(jnp.exp(shifted), axis=-1, keepdims=True))
    o_ref[...] = (shifted - lse).astype(o_ref.dtype)


def mlp_forward(x, w1_bf, w2_pad):
    """x: [B, 784] f32, w1_bf/w2_pad from prepare_params -> [B, 10] f32 log-probs."""
    B = x.shape[0]
    TM, B_pad = _choose_tile(B)

    # Only the (usually tiny) batch-dim zero-pad remains per call; no feature pad,
    # no per-call weight casts.
    x_in = x if B_pad == B else jnp.pad(x, ((0, B_pad - B), (0, 0)))

    grid = (B_pad // TM,)

    cost = pl.CostEstimate(
        flops=2 * B_pad * IN_FEATURES * HIDDEN + 2 * B_pad * HIDDEN * OUT_PAD,
        transcendentals=B_pad * (OUT_PAD + 1),  # exp per (padded) logit + log per row
        bytes_accessed=(B_pad * IN_FEATURES * 4          # x (f32, streamed)
                        + IN_FEATURES * HIDDEN * 2       # w1 (bf16, resident)
                        + HIDDEN * OUT_PAD * 4           # w2 (f32, resident)
                        + B_pad * OUT_PAD * 4),          # output writeback
    )

    out = pl.pallas_call(
        mlp_kernel,
        out_shape=jax.ShapeDtypeStruct((B_pad, OUT_PAD), jnp.float32),
        grid=grid,
        in_specs=[
            # x: streamed per batch tile (auto double-buffered); full native 784
            # feature dim (legal: full last dim), f32->bf16 cast happens in-kernel.
            pl.BlockSpec((TM, IN_FEATURES), lambda i: (i, 0)),
            # w1/w2: constant block index -> VMEM-resident across grid steps.
            # (pipeline_mode=pl.Buffered(1) would shave ~0.8 MiB VMEM; not needed here.)
            pl.BlockSpec((IN_FEATURES, HIDDEN), lambda i: (0, 0)),
            pl.BlockSpec((HIDDEN, OUT_PAD), lambda i: (0, 0)),
        ],
        # Lane-dense (128-wide) output block -> unmasked vst / full writeback DMAs.
        out_specs=pl.BlockSpec((TM, OUT_PAD), lambda i: (i, 0)),
        compiler_params=pltpu.CompilerParams(
            dimension_semantics=("parallel",),     # shard batch tiles across TCs (v7x)
            vmem_limit_bytes=32 * 1024 * 1024,
        ),
        cost_estimate=cost,
    )(x_in, w1_bf, w2_pad)

    return out[:B, :OUT_FEATURES]


def reference_forward_kernel_arith(x, w1, w2):
    """Mirrors the kernel's arithmetic (bf16 layer-1 operands, f32 everywhere else)."""
    h = jnp.maximum(
        jnp.dot(x.astype(jnp.bfloat16), w1.astype(jnp.bfloat16),
                preferred_element_type=jnp.float32), 0.0)
    logits = jnp.dot(h, w2, preferred_element_type=jnp.float32)
    return jax.nn.log_softmax(logits, axis=1)


def reference_forward_f32(x, w1, w2):
    """Full-precision reference of the PyTorch module."""
    h = jnp.maximum(x @ w1, 0.0)
    logits = h @ w2
    return jax.nn.log_softmax(logits, axis=1)


if __name__ == "__main__":
    key = jax.random.PRNGKey(0)
    kx, k1, k2 = jax.random.split(key, 3)

    B = 8
    IN, HID, OUT = IN_FEATURES, HIDDEN, OUT_FEATURES

    # Deterministic inputs (roughly matching nn.Linear's uniform fan-in init).
    x = jax.random.normal(kx, (B, IN), dtype=jnp.float32)
    w1 = jax.random.uniform(k1, (IN, HID), dtype=jnp.float32,
                            minval=-1.0 / (IN ** 0.5), maxval=1.0 / (IN ** 0.5))
    w2 = jax.random.uniform(k2, (HID, OUT), dtype=jnp.float32,
                            minval=-1.0 / (HID ** 0.5), maxval=1.0 / (HID ** 0.5))

    # One-time weight preparation (hoisted out of the forward path).
    w1_bf, w2_pad = prepare_params(w1, w2)

    out = mlp_forward(x, w1_bf, w2_pad)
    out = jax.block_until_ready(out)
    assert out.shape == (B, OUT), out.shape
    assert bool(jnp.all(jnp.isfinite(out))), "non-finite values in output"

    ref_arith = reference_forward_kernel_arith(x, w1, w2)
    assert jnp.allclose(out, ref_arith, atol=2e-3, rtol=2e-3), \
        "mismatch vs kernel-arithmetic reference"

    ref_f32 = reference_forward_f32(x, w1, w2)
    assert jnp.allclose(out, ref_f32, atol=5e-2, rtol=5e-2), \
        "mismatch vs f32 reference"

    print("KERNEL_OK")
</pallas_src>

<mosaic_0001>
module attributes {stable_mosaic.version = 11 : i64} {
  func.func @mlp_kernel(%arg0: i32, %arg1: memref<16x784xf32, #tpu.memory_space<vmem>>, %arg2: memref<784x512xbf16, #tpu.memory_space<vmem>>, %arg3: memref<512x128xf32, #tpu.memory_space<vmem>>, %arg4: memref<16x128xf32, #tpu.memory_space<vmem>>) attributes {dimension_semantics = [#tpu.dimension_semantics<parallel>], iteration_bounds = array<i64: 1>, scalar_prefetch = 0 : i64, scratch_operands = 0 : i64, tpu.core_type = #tpu.core_type<tc>, window_params = [{transform_indices = @transform_0, window_bounds = array<i64: 16, 784>}, {pipeline_mode = #tpu.pipeline_mode<synchronous>, transform_indices = @transform_1, window_bounds = array<i64: 784, 512>}, {pipeline_mode = #tpu.pipeline_mode<synchronous>, transform_indices = @transform_2, window_bounds = array<i64: 512, 128>}, {transform_indices = @transform_3, window_bounds = array<i64: 16, 128>}]} {
    %c0 = arith.constant 0 : index
    %c0_0 = arith.constant 0 : index
    %0 = vector.load %arg1[%c0, %c0_0] : memref<16x784xf32, #tpu.memory_space<vmem>>, vector<16x784xf32>
    %1 = arith.truncf %0 : vector<16x784xf32> to vector<16x784xbf16>
    %c0_1 = arith.constant 0 : index
    %c0_2 = arith.constant 0 : index
    %2 = vector.load %arg2[%c0_1, %c0_2] : memref<784x512xbf16, #tpu.memory_space<vmem>>, vector<784x512xbf16>
    %cst = arith.constant dense<0.000000e+00> : vector<16x512xf32>
    %3 = tpu.matmul %1, %2, %cst {dimension_numbers = #tpu.dot_dimension_numbers<[1], [0], [0], [1], [0, 0, 1, 1], [], []>} : vector<16x784xbf16>, vector<784x512xbf16>, vector<16x512xf32> -> vector<16x512xf32>
    %cst_3 = arith.constant 0.000000e+00 : f32
    %4 = vector.broadcast %cst_3 : f32 to vector<16x512xf32>
    %5 = arith.maximumf %3, %4 : vector<16x512xf32>
    %c0_4 = arith.constant 0 : index
    %c0_5 = arith.constant 0 : index
    %6 = vector.load %arg3[%c0_4, %c0_5] : memref<512x128xf32, #tpu.memory_space<vmem>>, vector<512x128xf32>
    %cst_6 = arith.constant dense<0.000000e+00> : vector<16x128xf32>
    %7 = tpu.matmul %5, %6, %cst_6 {dimension_numbers = #tpu.dot_dimension_numbers<[1], [0], [0], [1], [0, 0, 1, 1], [], []>} : vector<16x512xf32>, vector<512x128xf32>, vector<16x128xf32> -> vector<16x128xf32>
    %8 = tpu.iota {dimensions = array<i32: 1>} : vector<16x128xi32>
    %c10_i32 = arith.constant 10 : i32
    %9 = vector.broadcast %c10_i32 : i32 to vector<16x128xi32>
    %10 = arith.cmpi slt, %8, %9 : vector<16x128xi32>
    %cst_7 = arith.constant 0xFF800000 : f32
    %11 = vector.broadcast %cst_7 : f32 to vector<16x128xf32>
    %12 = arith.select %10, %7, %11 : vector<16x128xi1>, vector<16x128xf32>
    %cst_8 = arith.constant dense<0xFF800000> : vector<16xf32>
    %13 = vector.multi_reduction <maximumf>, %12, %cst_8 [1] : vector<16x128xf32> to vector<16xf32>
    %14 = vector.shape_cast %13 : vector<16xf32> to vector<16x1xf32>
    %15 = vector.broadcast %14 : vector<16x1xf32> to vector<16x128xf32>
    %16 = arith.subf %12, %15 : vector<16x128xf32>
    %17 = math.exp %16 : vector<16x128xf32>
    %cst_9 = arith.constant dense<0.000000e+00> : vector<16xf32>
    %18 = vector.multi_reduction <add>, %17, %cst_9 [1] : vector<16x128xf32> to vector<16xf32>
    %19 = vector.shape_cast %18 : vector<16xf32> to vector<16x1xf32>
    %20 = math.log %19 : vector<16x1xf32>
    %21 = vector.broadcast %20 : vector<16x1xf32> to vector<16x128xf32>
    %22 = arith.subf %16, %21 : vector<16x128xf32>
    %c0_10 = arith.constant 0 : index
    %c0_11 = arith.constant 0 : index
    %23 = vector.load %arg4[%c0_10, %c0_11] : memref<16x128xf32, #tpu.memory_space<vmem>>, vector<16x128xf32>
    tpu.vector_store %arg4[%c0_10, %c0_11], %22 {strides = array<i32>} : memref<16x128xf32, #tpu.memory_space<vmem>>, vector<16x128xf32>,
    return
  }
  func.func @transform_0(%arg0: i32) -> (i32, i32) {
    %c0_i32 = arith.constant 0 : i32
    %c0_i32_0 = arith.constant 0 : i32
    return %arg0, %c0_i32 : i32, i32
  }
  func.func @transform_1(%arg0: i32) -> (i32, i32) {
    %c0_i32 = arith.constant 0 : i32
    %c0_i32_0 = arith.constant 0 : i32
    %c0_i32_1 = arith.constant 0 : i32
    return %c0_i32, %c0_i32_0 : i32, i32
  }
  func.func @transform_2(%arg0: i32) -> (i32, i32) {
    %c0_i32 = arith.constant 0 : i32
    %c0_i32_0 = arith.constant 0 : i32
    %c0_i32_1 = arith.constant 0 : i32
    return %c0_i32, %c0_i32_0 : i32, i32
  }
  func.func @transform_3(%arg0: i32) -> (i32, i32) {
    %c0_i32 = arith.constant 0 : i32
    %c0_i32_0 = arith.constant 0 : i32
    return %arg0, %c0_i32 : i32, i32
  }
}

</mosaic_0001>

<bundles_post_ra>
// kernel: tpu_custom_call.1
= control target key start
LH: loop header
LB: loop body
LE: loop exit
PB: predicated region body
PF: predicated region fallthrough
CT: control target
= control target key end

     0   :  { %8 = vsyncpa [#allocation3], 0  ;;  %s3065_s0 = inlined_call_operand.hbm [shape: f32[16,784], index: 0, kind: input, shape index: {}]   ;;  %s3066_s1 = inlined_call_operand.hbm [shape: bf16[784,512], index: 1, kind: input, shape index: {}]   ;;  %s3067_s2 = inlined_call_operand.hbm [shape: f32[512,128], index: 2, kind: input, shape index: {}]   ;;  %s3068_s3 = inlined_call_operand.hbm [shape: f32[16,128], index: 3, kind: output, shape index: {}]  }
   0x1   :  { %9 = vsyncpa [#allocation6], 0  ;;  %s28_s14 = sshll.u32 %s3066_s1, 4  ;;  %s29_s14 = int_to_ptr.hbm [resolvable:$true] %s28_s14 }
   0x2   :  { %10 = vsyncpa [#allocation4], 0  ;;  %s2971_s15 = smov [#allocation5]   ;;  %s15_s19 = sshll.u32 %s3065_s0, 4  ;;  %s16_s19 = int_to_ptr.hbm [resolvable:$true] %s15_s19 }
   0x3   :  { %s30_s16 = sshll.u32 %s2971_s15, 4  ;;  %s2972_s20 = smov 256   ;;  %s31_s16 = int_to_ptr.vmem [resolvable:$true] %s30_s16 }
   0x4   :  { %s2973_s21 = smov 16   ;;  %s2974_s22 = smov [#allocation2]  }
   0x5   :  { %36 = dma.hbm_to_vmem [thread:$0]  %s29_s14, 25088, %s31_s16, [#allocation6], %s2972_s20, %s2972_s20, %s2973_s21  }
   0x6   :  { %s17_s23 = sshll.u32 %s2974_s22, 4  ;;  %s2975_s24 = smov 896   ;;  %s18_s23 = int_to_ptr.vmem [resolvable:$true] %s17_s23 }
   0x7   :  { %s2976_s25 = smov 56   ;;  %s41_s27 = sshll.u32 %s3067_s2, 4  ;;  %s42_s27 = int_to_ptr.hbm [resolvable:$true] %s41_s27 }
   0x8   :  { %23 = dma.hbm_to_vmem [thread:$0]  %s16_s19, 1792, %s18_s23, [#allocation3], %s2975_s24, %s2975_s24, %s2976_s25  }
   0x9   :  { %s2977_s28 = smov [#allocation7]   ;;  %s2978_s30 = smov 128  }
   0xa   :  { %s43_s29 = sshll.u32 %s2977_s28, 4  ;;  %s2979_s0 = smov 8   ;;  %s44_s29 = int_to_ptr.vmem [resolvable:$true] %s43_s29 }
   0xb   :  { %49 = dma.hbm_to_vmem [thread:$0]  %s42_s27, 8192, %s44_s29, [#allocation6], %s2978_s30, %s2978_s30, %s2979_s0  }
   0xc   :  { %2965 = dma.done.wait [#allocation3], 1792  }
   0xd   :  { %2966 = vsyncadd [#allocation3], 4294965504 }
   0xe   :  { %2967 = dma.done.wait [#allocation6], 33280  }
   0xf   :  { %2968 = vsyncadd [#allocation6], 4294934016  ;;  %v1981_v0 = vld [vmem:[#allocation5 + $0xe0] sm:$0xf]  ;;  %v2685_v1 = vld [vmem:[#allocation5 + $0xec] sm:$0xf0] }
  0x10   :  { %v2109_v2 = vld [vmem:[#allocation5 + $0x1e0] sm:$0xf]  ;;  %v1982_v3 = vor.u32 %v2685_v1, %v1981_v0  ;;  %v2717_v4 = vld [vmem:[#allocation5 + $0x1ec] sm:$0xf0]  ;;  %vm1260_vm0 = vcmask 130048   ;;  %s2980_s2 = smov [#allocation8]  }
  0x11   :  { %v2237_v5 = vld [vmem:[#allocation5 + $0x2e0] sm:$0xf]  ;;  %v2749_v6 = vld [vmem:[#allocation5 + $0x2ec] sm:$0xf0]  ;;  %v2110_v7 = vor.u32 %v2717_v4, %v2109_v2  ;;  %s1851_s4 = sshll.u32 %s2980_s2, 4  ;;  %s1853_s7 = sshll.u32 %s3068_s3, 4  ;;  %s1852_s4 = int_to_ptr.vmem [resolvable:$true] %s1851_s4  ;;  %s1854_s7 = int_to_ptr.hbm [resolvable:$true] %s1853_s7 }
  0x12   :  { %v2238_v8 = vor.u32 %v2749_v6, %v2237_v5  ;;  %v2365_v9 = vld [vmem:[#allocation5 + $0x3e0] sm:$0xf]  ;;  %v2781_v10 = vld [vmem:[#allocation5 + $0x3ec] sm:$0xf0]  ;;  %1264 = vmatpush.bf16.msra.mxu0 %v1982_v3 }
  0x13   :  { %v1965_v11 = vld [vmem:[#allocation5 + $0xc0] sm:$0xf]  ;;  %v2366_v12 = vor.u32 %v2781_v10, %v2365_v9  ;;  %v2681_v13 = vld [vmem:[#allocation5 + $0xcc] sm:$0xf0]  ;;  %1278 = vmatpush.bf16.msra.mxu1 %v2110_v7 }
  0x14   :  { %v2093_v14 = vld [vmem:[#allocation5 + $0x1c0] sm:$0xf]  ;;  %v2713_v15 = vld [vmem:[#allocation5 + $0x1cc] sm:$0xf0]  ;;  %1292 = vmatpush.bf16.msra.mxu2 %v2238_v8  ;;  %v1966_v16 = vor.u32 %v2681_v13, %v1965_v11 }
  0x15   :  { %v2094_v17 = vor.u32 %v2713_v15, %v2093_v14  ;;  %v2221_v18 = vld [vmem:[#allocation5 + $0x2c0] sm:$0xf]  ;;  %v2745_v19 = vld [vmem:[#allocation5 + $0x2cc] sm:$0xf0]  ;;  %1306 = vmatpush.bf16.msra.mxu3 %v2366_v12 }
  0x16   :  { %v2349_v20 = vld [vmem:[#allocation5 + $0x3c0] sm:$0xf]  ;;  %v2222_v21 = vor.u32 %v2745_v19, %v2221_v18  ;;  %v2777_v22 = vld [vmem:[#allocation5 + $0x3cc] sm:$0xf0]  ;;  %1265 = vmatpush.bf16.msra.mxu0 %v1966_v16 }
  0x17   :  { %v1949_v23 = vld [vmem:[#allocation5 + $0xa0] sm:$0xf]  ;;  %v2677_v24 = vld [vmem:[#allocation5 + $0xac] sm:$0xf0]  ;;  %v2350_v25 = vor.u32 %v2777_v22, %v2349_v20  ;;  %1279 = vmatpush.bf16.msra.mxu1 %v2094_v17 }
  0x18   :  { %v2077_v26 = vld [vmem:[#allocation5 + $0x1a0] sm:$0xf]  ;;  %v2709_v27 = vld [vmem:[#allocation5 + $0x1ac] sm:$0xf0]  ;;  %v1950_v29 = vor.u32 %v2677_v24, %v1949_v23  ;;  %1293 = vmatpush.bf16.msra.mxu2 %v2222_v21 }
  0x19   :  { %v2205_v28 = vld [vmem:[#allocation5 + $0x2a0] sm:$0xf]  ;;  %v2741_v30 = vld [vmem:[#allocation5 + $0x2ac] sm:$0xf0]  ;;  %v2078_v33 = vor.u32 %v2709_v27, %v2077_v26  ;;  %1307 = vmatpush.bf16.msra.mxu3 %v2350_v25 }
  0x1a   :  { %v2333_v31 = vld [vmem:[#allocation5 + $0x3a0] sm:$0xf]  ;;  %v2773_v32 = vld [vmem:[#allocation5 + $0x3ac] sm:$0xf0]  ;;  %v2206_v34 = vor.u32 %v2741_v30, %v2205_v28  ;;  %1266 = vmatpush.bf16.msra.mxu0 %v1950_v29 }
  0x1b   :  { %v1933_v35 = vld [vmem:[#allocation5 + $0x80] sm:$0xf]  ;;  %v2673_v36 = vld [vmem:[#allocation5 + $0x8c] sm:$0xf0]  ;;  %v2334_v38 = vor.u32 %v2773_v32, %v2333_v31  ;;  %1280 = vmatpush.bf16.msra.mxu1 %v2078_v33  ;;  %v2683_v32 = vld [vmem:[#allocation5 + $0xe4] sm:$0xf] }
  0x1c   :  { %v2061_v37 = vld [vmem:[#allocation5 + $0x180] sm:$0xf]  ;;  %v2705_v39 = vld [vmem:[#allocation5 + $0x18c] sm:$0xf0]  ;;  %v1934_v44 = vor.u32 %v2673_v36, %v1933_v35  ;;  %1294 = vmatpush.bf16.msra.mxu2 %v2206_v34  ;;  %v1983_v33 = vld [vmem:[#allocation5 + $0xf0] sm:$0xf0] }
  0x1d   :  { %v2189_v40 = vld [vmem:[#allocation5 + $0x280] sm:$0xf]  ;;  %v2737_v41 = vld [vmem:[#allocation5 + $0x28c] sm:$0xf0]  ;;  %v2062_v45 = vor.u32 %v2705_v39, %v2061_v37  ;;  %1308 = vmatpush.bf16.msra.mxu3 %v2334_v38  ;;  %v72_v36 = vld [vmem:[#allocation2 + $0x48] sm:$0xff] }
  0x1e   :  { %v2317_v42 = vld [vmem:[#allocation5 + $0x380] sm:$0xf]  ;;  %v2769_v43 = vld [vmem:[#allocation5 + $0x38c] sm:$0xf0]  ;;  %v2190_v46 = vor.u32 %v2737_v41, %v2189_v40  ;;  %1267 = vmatpush.bf16.msra.mxu0 %v1934_v44  ;;  %v2715_v41 = vld [vmem:[#allocation5 + $0x1e4] sm:$0xf] }
  0x1f   :  { %v1917_v47 = vld [vmem:[#allocation5 + $0x60] sm:$0xf]  ;;  %v2669_v48 = vld [vmem:[#allocation5 + $0x6c] sm:$0xf0]  ;;  %v2318_v50 = vor.u32 %v2769_v43, %v2317_v42  ;;  %1281 = vmatpush.bf16.msra.mxu1 %v2062_v45  ;;  %v70_v43 = vld [vmem:[#allocation2 + $0x38] sm:$0xff] }
  0x20   :  { %v2045_v49 = vld [vmem:[#allocation5 + $0x160] sm:$0xf]  ;;  %v2701_v51 = vld [vmem:[#allocation5 + $0x16c] sm:$0xf0]  ;;  %v1918_v56 = vor.u32 %v2669_v48, %v1917_v47  ;;  %1295 = vmatpush.bf16.msra.mxu2 %v2190_v46  ;;  %v2111_v46 = vld [vmem:[#allocation5 + $0x1f0] sm:$0xf0] }
  0x21   :  { %v2173_v52 = vld [vmem:[#allocation5 + $0x260] sm:$0xf]  ;;  %v2733_v53 = vld [vmem:[#allocation5 + $0x26c] sm:$0xf0]  ;;  %v2046_v57 = vor.u32 %v2701_v51, %v2045_v49  ;;  %1309 = vmatpush.bf16.msra.mxu3 %v2318_v50  ;;  %v66_v47 = vld [vmem:[#allocation2 + $0x18] sm:$0xff]  ;;  %v1986_v50 = vor.u32 %v2683_v32, %v1983_v33 }
  0x22   :  { %v2301_v54 = vld [vmem:[#allocation5 + $0x360] sm:$0xf]  ;;  %v2765_v55 = vld [vmem:[#allocation5 + $0x36c] sm:$0xf0]  ;;  %v2174_v58 = vor.u32 %v2733_v53, %v2173_v52  ;;  %1268 = vmatpush.bf16.msra.mxu0 %v1918_v56  ;;  %v2679_v56 = vld [vmem:[#allocation5 + $0xc4] sm:$0xf] }
  0x23   :  { %v1901_v59 = vld [vmem:[#allocation5 + $0x40] sm:$0xf]  ;;  %v2665_v60 = vld [vmem:[#allocation5 + $0x4c] sm:$0xf0]  ;;  %v2302_v62 = vor.u32 %v2765_v55, %v2301_v54  ;;  %1282 = vmatpush.bf16.msra.mxu1 %v2046_v57  ;;  %v1967_v57 = vld [vmem:[#allocation5 + $0xd0] sm:$0xf0] }
  0x24   :  { %v2029_v61 = vld [vmem:[#allocation5 + $0x140] sm:$0xf]  ;;  %v2697_v63 = vld [vmem:[#allocation5 + $0x14c] sm:$0xf0]  ;;  %v1902_v4 = vor.u32 %v2665_v60, %v1901_v59  ;;  %1296 = vmatpush.bf16.msra.mxu2 %v2174_v58 }
  0x25   :  { %v2157_v0 = vld [vmem:[#allocation5 + $0x240] sm:$0xf]  ;;  %v2729_v1 = vld [vmem:[#allocation5 + $0x24c] sm:$0xf0]  ;;  %v2030_v6 = vor.u32 %v2697_v63, %v2029_v61  ;;  %1310 = vmatpush.bf16.msra.mxu3 %v2302_v62  ;;  %v64_v61 = vld [vmem:[#allocation2 + $0x8] sm:$0xff]  ;;  %v2114_v63 = vor.u32 %v2715_v41, %v2111_v46 }
  0x26   :  { %v2285_v2 = vld [vmem:[#allocation5 + $0x340] sm:$0xf]  ;;  %v2761_v3 = vld [vmem:[#allocation5 + $0x34c] sm:$0xf0]  ;;  %v2158_v7 = vor.u32 %v2729_v1, %v2157_v0  ;;  %1269 = vmatpush.bf16.msra.mxu0 %v1902_v4  ;;  %v2711_v1 = vld [vmem:[#allocation5 + $0x1c4] sm:$0xf]  ;;  %v1970_v4 = vor.u32 %v2679_v56, %v1967_v57 }
  0x27   :  { %v1885_v5 = vld [vmem:[#allocation5 + $0x20] sm:$0xf]  ;;  %v2661_v8 = vld [vmem:[#allocation5 + $0x2c] sm:$0xf0]  ;;  %v2286_v11 = vor.u32 %v2761_v3, %v2285_v2  ;;  %1283 = vmatpush.bf16.msra.mxu1 %v2030_v6  ;;  %v2095_v2 = vld [vmem:[#allocation5 + $0x1d0] sm:$0xf0] }
  0x28   :  { %v2013_v9 = vld [vmem:[#allocation5 + $0x120] sm:$0xf]  ;;  %v2693_v10 = vld [vmem:[#allocation5 + $0x12c] sm:$0xf0]  ;;  %v1886_v18 = vor.u32 %v2661_v8, %v1885_v5  ;;  %1297 = vmatpush.bf16.msra.mxu2 %v2158_v7  ;;  %v2047_v41 = vld [vmem:[#allocation5 + $0x170] sm:$0xf0] }
  0x29   :  { %v2141_v12 = vld [vmem:[#allocation5 + $0x220] sm:$0xf]  ;;  %v2725_v13 = vld [vmem:[#allocation5 + $0x22c] sm:$0xf0]  ;;  %v2014_v23 = vor.u32 %v2693_v10, %v2013_v9  ;;  %1311 = vmatpush.bf16.msra.mxu3 %v2286_v11  ;;  %v2675_v10 = vld [vmem:[#allocation5 + $0xa4] sm:$0xf] }
  0x2a   :  { %v2269_v14 = vld [vmem:[#allocation5 + $0x320] sm:$0xf]  ;;  %v2757_v15 = vld [vmem:[#allocation5 + $0x32c] sm:$0xf0]  ;;  %v2142_v24 = vor.u32 %v2725_v13, %v2141_v12  ;;  %1270 = vmatpush.bf16.msra.mxu0 %v1886_v18  ;;  %v1951_v11 = vld [vmem:[#allocation5 + $0xb0] sm:$0xf0]  ;;  %v2098_v12 = vor.u32 %v2711_v1, %v2095_v2 }
  0x2b   :  { %v1869_v16 = vld [vmem:[#allocation5] sm:$0xf]  ;;  %v2657_v17 = vld [vmem:[#allocation5 + $0xc] sm:$0xf0]  ;;  %v2270_v28 = vor.u32 %v2757_v15, %v2269_v14  ;;  %1284 = vmatpush.bf16.msra.mxu1 %v2014_v23  ;;  %v2707_v14 = vld [vmem:[#allocation5 + $0x1a4] sm:$0xf] }
  0x2c   :  { %v1997_v19 = vld [vmem:[#allocation5 + $0x100] sm:$0xf]  ;;  %v2689_v20 = vld [vmem:[#allocation5 + $0x10c] sm:$0xf0]  ;;  %v1870_v35 = vor.u32 %v2657_v17, %v1869_v16  ;;  %1298 = vmatpush.bf16.msra.mxu2 %v2142_v24  ;;  %v2079_v15 = vld [vmem:[#allocation5 + $0x1b0] sm:$0xf0]  ;;  %v1954_v17 = vor.u32 %v2675_v10, %v1951_v11 }
  0x2d   :  { %v2125_v21 = vld [vmem:[#allocation5 + $0x200] sm:$0xf]  ;;  %v2721_v22 = vld [vmem:[#allocation5 + $0x20c] sm:$0xf0]  ;;  %v1998_v39 = vor.u32 %v2689_v20, %v1997_v19  ;;  %1312 = vmatpush.bf16.msra.mxu3 %v2270_v28  ;;  %v1935_v23 = vld [vmem:[#allocation5 + $0x90] sm:$0xf0]  ;;  %v2082_v24 = vor.u32 %v2707_v14, %v2079_v15 }
  0x2e   :  { %v2253_v25 = vld [vmem:[#allocation5 + $0x300] sm:$0xf]  ;;  %v2753_v26 = vld [vmem:[#allocation5 + $0x30c] sm:$0xf0]  ;;  %v2126_v40 = vor.u32 %v2721_v22, %v2125_v21  ;;  %1271 = vmatpush.bf16.msra.mxu0 %v1870_v35  ;;  %v2671_v22 = vld [vmem:[#allocation5 + $0x84] sm:$0xf] }
  0x2f   :  { %v2493_v27 = vld [vmem:[#allocation5 + $0x4e0] sm:$0xf]  ;;  %v2813_v29 = vld [vmem:[#allocation5 + $0x4ec] sm:$0xf0]  ;;  %v2254_v44 = vor.u32 %v2753_v26, %v2253_v25  ;;  %1285 = vmatpush.bf16.msra.mxu1 %v1998_v39  ;;  %v2703_v26 = vld [vmem:[#allocation5 + $0x184] sm:$0xf] }
  0x30   :  { %v2621_v30 = vld [vmem:[#allocation5 + $0x5e0] sm:$0xf]  ;;  %v2845_v31 = vld [vmem:[#allocation5 + $0x5ec] sm:$0xf0]  ;;  %v2494_v45 = vor.u32 %v2813_v29, %v2493_v27  ;;  %1299 = vmatpush.bf16.msra.mxu2 %v2126_v40  ;;  %v2063_v27 = vld [vmem:[#allocation5 + $0x190] sm:$0xf0]  ;;  %v1938_v29 = vor.u32 %v2671_v22, %v1935_v23 }
  0x31   :  { %v65_v34 = vld [vmem:[#allocation2 + $0x10] sm:$0xff]  ;;  %v2849_v38 = vld [vmem:[#allocation5 + $0x60c] sm:$0xf0]  ;;  %v2622_v49 = vor.u32 %v2845_v31, %v2621_v30  ;;  %1313 = vmatpush.bf16.msra.mxu3 %v2254_v44  ;;  %v1919_v35 = vld [vmem:[#allocation5 + $0x70] sm:$0xf0] }
  0x32   :  { %v2637_v37 = vld [vmem:[#allocation5 + $0x600] sm:$0xf]  ;;  %v63_v42 = vld [vmem:[#allocation2] sm:$0xff]  ;;  %v3013_v54 = vpack.c.bf16 %v72_v36, %v65_v34  ;;  %1320 = vmatpush.bf16.msrb.mxu0 %v2494_v45  ;;  %v2667_v34 = vld [vmem:[#allocation5 + $0x64] sm:$0xf] }
  0x33   :  { %v73_v48 = vld [vmem:[#allocation2 + $0x50] sm:$0xff]  ;;  %v2809_v52 = vld [vmem:[#allocation5 + $0x4cc] sm:$0xf0]  ;;  %v3015_v58 = vpack.c.bf16 %v70_v43, %v63_v42  ;;  %v2638_v59 = vor.u32 %v2849_v38, %v2637_v37  ;;  %1334 = vmatpush.bf16.msrb.mxu1 %v2622_v49  ;;  %v76_v37 = vld [vmem:[#allocation2 + $0x68] sm:$0xff]  ;;  %v2066_v38 = vor.u32 %v2703_v26, %v2063_v27  ;;  %v1922_v43 = vor.u32 %v2667_v34, %v1919_v35 }
  0x34   :  { %v2477_v51 = vld [vmem:[#allocation5 + $0x4c0] sm:$0xf]  ;;  %v2841_v55 = vld [vmem:[#allocation5 + $0x5cc] sm:$0xf0]  ;;  %v3017_v60 = vpack.c.bf16 %v73_v48, %v66_v47  ;;  %1300 = vmatmul.bf16.vlgmr.msra.gmra.mxu2 %v3013_v54  ;;  %v2699_v40 = vld [vmem:[#allocation5 + $0x164] sm:$0xf] }
  0x35   :  { %v2605_v53 = vld [vmem:[#allocation5 + $0x5c0] sm:$0xf]  ;;  %v71_v62 = vld [vmem:[#allocation2 + $0x40] sm:$0xff]  ;;  %v2478_v0 = vor.u32 %v2809_v52, %v2477_v51  ;;  %1362 = vmatpush.bf16.msrb.mxu3 %v1986_v50  ;;  %1272 = vmatmul.bf16.vlgmr.msra.gmra.mxu0 %v3015_v58  ;;  %v2663_v48 = vld [vmem:[#allocation5 + $0x44] sm:$0xf]  ;;  %v2050_v51 = vor.u32 %v2699_v40, %v2047_v41 }
  0x36   :  { %v2606_v3 = vor.u32 %v2841_v55, %v2605_v53  ;;  %v2461_v5 = vld [vmem:[#allocation5 + $0x4a0] sm:$0xf]  ;;  %v2805_v6 = vld [vmem:[#allocation5 + $0x4ac] sm:$0xf0]  ;;  %v3021_v8 = vpack.c.bf16 %v71_v62, %v64_v61  ;;  %1355 = vmatpush.bf16.msrb.mxu2 %v2638_v59  ;;  %1314 = vmatmul.bf16.vlgmr.msra.gmra.mxu3 %v3017_v60  ;;  %v1903_v49 = vld [vmem:[#allocation5 + $0x50] sm:$0xf0] }
  0x37   :  { %v2589_v7 = vld [vmem:[#allocation5 + $0x5a0] sm:$0xf]  ;;  %v2837_v9 = vld [vmem:[#allocation5 + $0x5ac] sm:$0xf0]  ;;  %1321 = vmatpush.bf16.msrb.mxu0 %v2478_v0  ;;  %v2462_v13 = vor.u32 %v2805_v6, %v2461_v5  ;;  %v2695_v53 = vld [vmem:[#allocation5 + $0x144] sm:$0xf]  ;;  %v1906_v57 = vor.u32 %v2663_v48, %v1903_v49 }
  0x38   :  { %1335 = vmatpush.bf16.msrb.mxu1 %v2606_v3  ;;  %v2590_v16 = vor.u32 %v2837_v9, %v2589_v7  ;;  %v2445_v18 = vld [vmem:[#allocation5 + $0x480] sm:$0xf]  ;;  %v2801_v19 = vld [vmem:[#allocation5 + $0x48c] sm:$0xf0]  ;;  %v2031_v55 = vld [vmem:[#allocation5 + $0x150] sm:$0xf0] }
  0x39   :  { %1363 = vmatpush.bf16.msrb.mxu3 %v1970_v4  ;;  %v2573_v20 = vld [vmem:[#allocation5 + $0x580] sm:$0xf]  ;;  %1286 = vmatmul.bf16.vlgmr.msra.gmra.mxu1 %v3021_v8  ;;  %v2833_v21 = vld [vmem:[#allocation5 + $0x58c] sm:$0xf0]  ;;  %v2446_v25 = vor.u32 %v2801_v19, %v2445_v18  ;;  %v2659_v0 = vld [vmem:[#allocation5 + $0x24] sm:$0xf]  ;;  %v2034_v4 = vor.u32 %v2695_v53, %v2031_v55 }
  0x3a   :  { %1376 = vmatpush.bf16.msra.mxu2 %v2114_v63  ;;  %v2574_v28 = vor.u32 %v2833_v21, %v2573_v20  ;;  %v2429_v30 = vld [vmem:[#allocation5 + $0x460] sm:$0xf]  ;;  %v2797_v31 = vld [vmem:[#allocation5 + $0x46c] sm:$0xf0]  ;;  %v1887_v1 = vld [vmem:[#allocation5 + $0x30] sm:$0xf0] }
  0x3b   :  { %1322 = vmatpush.bf16.msrb.mxu0 %v2462_v13  ;;  %v2557_v32 = vld [vmem:[#allocation5 + $0x560] sm:$0xf]  ;;  %v2829_v33 = vld [vmem:[#allocation5 + $0x56c] sm:$0xf0]  ;;  %v2430_v39 = vor.u32 %v2797_v31, %v2429_v30  ;;  %v2691_v2 = vld [vmem:[#allocation5 + $0x124] sm:$0xf]  ;;  %v1890_v11 = vor.u32 %v2659_v0, %v1887_v1 }
  0x3c   :  { %1336 = vmatpush.bf16.msrb.mxu1 %v2590_v16  ;;  %v69_v36 = vld [vmem:[#allocation2 + $0x30] sm:$0xff]  ;;  %v2558_v42 = vor.u32 %v2829_v33, %v2557_v32  ;;  %v2793_v45 = vld [vmem:[#allocation5 + $0x44c] sm:$0xf0]  ;;  %v2015_v3 = vld [vmem:[#allocation5 + $0x130] sm:$0xf0] }
  0x3d   :  { %1364 = vmatpush.bf16.msrb.mxu3 %v1954_v17  ;;  %v2413_v44 = vld [vmem:[#allocation5 + $0x440] sm:$0xf]  ;;  %v2825_v47 = vld [vmem:[#allocation5 + $0x54c] sm:$0xf0]  ;;  %v3025_v50 = vpack.c.bf16 %v76_v37, %v69_v36  ;;  %v2655_v13 = vld [vmem:[#allocation5 + $0x4] sm:$0xf]  ;;  %v2018_v21 = vor.u32 %v2691_v2, %v2015_v3 }
  0x3e   :  { %1377 = vmatpush.bf16.msra.mxu2 %v2098_v12  ;;  %v2541_v46 = vld [vmem:[#allocation5 + $0x540] sm:$0xf]  ;;  %v2414_v52 = vor.u32 %v2793_v45, %v2413_v44  ;;  %v2789_v61 = vld [vmem:[#allocation5 + $0x42c] sm:$0xf0]  ;;  %v1871_v14 = vld [vmem:[#allocation5 + $0x10] sm:$0xf0] }
  0x3f   :  { %1323 = vmatpush.bf16.msrb.mxu0 %v2446_v25  ;;  %v2542_v56 = vor.u32 %v2825_v47, %v2541_v46  ;;  %v2397_v59 = vld [vmem:[#allocation5 + $0x420] sm:$0xf]  ;;  %v2821_v63 = vld [vmem:[#allocation5 + $0x52c] sm:$0xf0]  ;;  %v2747_v15 = vld [vmem:[#allocation5 + $0x2e4] sm:$0xf]  ;;  %v1874_v27 = vor.u32 %v2655_v13, %v1871_v14 }
  0x40   :  { %1337 = vmatpush.bf16.msrb.mxu1 %v2574_v28  ;;  %v2525_v62 = vld [vmem:[#allocation5 + $0x520] sm:$0xf]  ;;  %v2398_v5 = vor.u32 %v2789_v61, %v2397_v59  ;;  %v2785_v7 = vld [vmem:[#allocation5 + $0x40c] sm:$0xf0]  ;;  %v2239_v16 = vld [vmem:[#allocation5 + $0x2f0] sm:$0xf0] }
  0x41   :  { %1365 = vmatpush.bf16.msrb.mxu3 %v1938_v29  ;;  %v2381_v6 = vld [vmem:[#allocation5 + $0x400] sm:$0xf]  ;;  %v2526_v10 = vor.u32 %v2821_v63, %v2525_v62  ;;  %v2817_v12 = vld [vmem:[#allocation5 + $0x50c] sm:$0xf0]  ;;  %v2779_v17 = vld [vmem:[#allocation5 + $0x3e4] sm:$0xf]  ;;  %v2242_v31 = vor.u32 %v2747_v15, %v2239_v16 }
  0x42   :  { %1378 = vmatpush.bf16.msra.mxu2 %v2082_v24  ;;  %v2509_v9 = vld [vmem:[#allocation5 + $0x500] sm:$0xf]  ;;  %v2367_v18 = vld [vmem:[#allocation5 + $0x3f0] sm:$0xf0]  ;;  %v2811_v19 = vld [vmem:[#allocation5 + $0x4e4] sm:$0xf]  ;;  %v2382_v22 = vor.u32 %v2785_v7, %v2381_v6 }
  0x43   :  { %1324 = vmatpush.bf16.msrb.mxu0 %v2430_v39  ;;  %v2495_v20 = vld [vmem:[#allocation5 + $0x4f0] sm:$0xf0]  ;;  %v74_v24 = vld [vmem:[#allocation2 + $0x58] sm:$0xff]  ;;  %v2687_v25 = vld [vmem:[#allocation5 + $0x104] sm:$0xf]  ;;  %v2510_v26 = vor.u32 %v2817_v12, %v2509_v9  ;;  %v2370_v32 = vor.u32 %v2779_v17, %v2367_v18 }
  0x44   :  { %1338 = vmatpush.bf16.msrb.mxu1 %v2558_v42  ;;  %2651 = vmatmul.msk.bf16.vlgmr.msrb.gmra.mxu2 %vm1260_vm0, %v3025_v50  ;;  %v67_v23 = vld [vmem:[#allocation2 + $0x20] sm:$0xff]  ;;  %v68_v29 = vld [vmem:[#allocation2 + $0x28] sm:$0xff]  ;;  %v2843_v33 = vld [vmem:[#allocation5 + $0x5e4] sm:$0xf]  ;;  %v2498_v36 = vor.u32 %v2811_v19, %v2495_v20 }
  0x45   :  { %1366 = vmatpush.bf16.msrb.mxu3 %v1922_v43  ;;  %v1999_v28 = vld [vmem:[#allocation5 + $0x110] sm:$0xf0]  ;;  %v2743_v35 = vld [vmem:[#allocation5 + $0x2c4] sm:$0xf]  ;;  %v3029_v37 = vpack.c.bf16 %v74_v24, %v67_v23 }
  0x46   :  { %1379 = vmatpush.bf16.msra.mxu2 %v2066_v38  ;;  %v75_v30 = vld [vmem:[#allocation2 + $0x60] sm:$0xff]  ;;  %v2775_v39 = vld [vmem:[#allocation5 + $0x3c4] sm:$0xf]  ;;  %v2002_v41 = vor.u32 %v2687_v25, %v1999_v28 }
  0x47   :  { %1325 = vmatpush.bf16.msrb.mxu0 %v2414_v52  ;;  %v2623_v34 = vld [vmem:[#allocation5 + $0x5f0] sm:$0xf0]  ;;  %v3031_v42 = vpack.c.bf16 %v75_v30, %v68_v29  ;;  %v2807_v43 = vld [vmem:[#allocation5 + $0x4c4] sm:$0xf] }
  0x48   :  { %1339 = vmatpush.bf16.msrb.mxu1 %v2542_v56  ;;  %v2223_v38 = vld [vmem:[#allocation5 + $0x2d0] sm:$0xf0]  ;;  %v2626_v45 = vor.u32 %v2843_v33, %v2623_v34  ;;  %v2839_v48 = vld [vmem:[#allocation5 + $0x5c4] sm:$0xf] }
  0x49   :  { %1367 = vmatpush.bf16.msrb.mxu3 %v1906_v57  ;;  %v2351_v40 = vld [vmem:[#allocation5 + $0x3d0] sm:$0xf0]  ;;  %v2226_v46 = vor.u32 %v2743_v35, %v2223_v38  ;;  %v2771_v55 = vld [vmem:[#allocation5 + $0x3a4] sm:$0xf] }
  0x4a   :  { %1380 = vmatpush.bf16.msra.mxu2 %v2050_v51  ;;  %v2479_v44 = vld [vmem:[#allocation5 + $0x4d0] sm:$0xf0]  ;;  %v2354_v47 = vor.u32 %v2775_v39, %v2351_v40  ;;  %v2739_v51 = vld [vmem:[#allocation5 + $0x2a4] sm:$0xf] }
  0x4b   :  { %1326 = vmatpush.bf16.msrb.mxu0 %v2398_v5  ;;  %v2607_v49 = vld [vmem:[#allocation5 + $0x5d0] sm:$0xf0]  ;;  %v2482_v52 = vor.u32 %v2807_v43, %v2479_v44  ;;  %v2803_v57 = vld [vmem:[#allocation5 + $0x4a4] sm:$0xf] }
  0x4c   :  { %1340 = vmatpush.bf16.msrb.mxu1 %v2526_v10  ;;  %v2207_v53 = vld [vmem:[#allocation5 + $0x2b0] sm:$0xf0]  ;;  %v2610_v61 = vor.u32 %v2839_v48, %v2607_v49  ;;  %v2835_v0 = vld [vmem:[#allocation5 + $0x5a4] sm:$0xf] }
  0x4d   :  { %1368 = vmatpush.bf16.msrb.mxu3 %v1890_v11  ;;  %v2335_v56 = vld [vmem:[#allocation5 + $0x3b0] sm:$0xf0]  ;;  %v2210_v62 = vor.u32 %v2739_v51, %v2207_v53  ;;  %v2735_v2 = vld [vmem:[#allocation5 + $0x284] sm:$0xf] }
  0x4e   :  { %1381 = vmatpush.bf16.msra.mxu2 %v2034_v4  ;;  %v2463_v59 = vld [vmem:[#allocation5 + $0x4b0] sm:$0xf0]  ;;  %v2338_v63 = vor.u32 %v2771_v55, %v2335_v56  ;;  %v2767_v5 = vld [vmem:[#allocation5 + $0x384] sm:$0xf] }
  0x4f   :  { %1327 = vmatpush.bf16.msrb.mxu0 %v2382_v22  ;;  %v2591_v1 = vld [vmem:[#allocation5 + $0x5b0] sm:$0xf0]  ;;  %v2466_v3 = vor.u32 %v2803_v57, %v2463_v59  ;;  %v2799_v7 = vld [vmem:[#allocation5 + $0x484] sm:$0xf] }
  0x50   :  { %1341 = vmatpush.bf16.msrb.mxu1 %v2510_v26  ;;  %v2191_v4 = vld [vmem:[#allocation5 + $0x290] sm:$0xf0]  ;;  %v2594_v10 = vor.u32 %v2835_v0, %v2591_v1  ;;  %v2831_v13 = vld [vmem:[#allocation5 + $0x584] sm:$0xf]  ;;  %v1989_v0 = vld [vmem:[#allocation5 + $0xe8] sm:$0xf] }
  0x51   :  { %1369 = vmatpush.bf16.msrb.mxu3 %v1874_v27  ;;  %v2319_v6 = vld [vmem:[#allocation5 + $0x390] sm:$0xf0]  ;;  %v2194_v11 = vor.u32 %v2735_v2, %v2191_v4  ;;  %v2731_v15 = vld [vmem:[#allocation5 + $0x264] sm:$0xf]  ;;  %v2686_v1 = vld [vmem:[#allocation5 + $0xf4] sm:$0xf0] }
  0x52   :  { %1382 = vmatpush.bf16.msra.mxu2 %v2018_v21  ;;  %1328 = vmatmul.bf16.vlgmr.msrb.gmra.mxu0 %v3029_v37  ;;  %v2447_v9 = vld [vmem:[#allocation5 + $0x490] sm:$0xf0]  ;;  %v2322_v12 = vor.u32 %v2767_v5, %v2319_v6  ;;  %v2763_v18 = vld [vmem:[#allocation5 + $0x364] sm:$0xf]  ;;  %v2245_v5 = vld [vmem:[#allocation5 + $0x2e8] sm:$0xf] }
  0x53   :  { %1390 = vmatpush.bf16.msra.mxu0 %v2242_v31  ;;  %1342 = vmatmul.bf16.vlgmr.msrb.gmra.mxu1 %v3031_v42  ;;  %v2575_v14 = vld [vmem:[#allocation5 + $0x590] sm:$0xf0]  ;;  %v2450_v16 = vor.u32 %v2799_v7, %v2447_v9  ;;  %v2795_v20 = vld [vmem:[#allocation5 + $0x464] sm:$0xf]  ;;  %v2750_v6 = vld [vmem:[#allocation5 + $0x2f4] sm:$0xf0] }
  0x54   :  { %1404 = vmatpush.bf16.msra.mxu1 %v2370_v32  ;;  %1370 = vmatmul.bf16.vlgmr.msrb.gmra.mxu3 %v3015_v58  ;;  %v2175_v17 = vld [vmem:[#allocation5 + $0x270] sm:$0xf0]  ;;  %v2578_v22 = vor.u32 %v2831_v13, %v2575_v14  ;;  %v2827_v25 = vld [vmem:[#allocation5 + $0x564] sm:$0xf]  ;;  %v1990_v13 = vor.u32 %v2686_v1, %v1989_v0  ;;  %v2373_v14 = vld [vmem:[#allocation5 + $0x3e8] sm:$0xf] }
  0x55   :  { %1418 = vmatpush.bf16.msra.mxu3 %v2498_v36  ;;  %v2303_v19 = vld [vmem:[#allocation5 + $0x370] sm:$0xf0]  ;;  %v2178_v23 = vor.u32 %v2731_v15, %v2175_v17  ;;  %v2727_v27 = vld [vmem:[#allocation5 + $0x244] sm:$0xf]  ;;  %v2782_v15 = vld [vmem:[#allocation5 + $0x3f4] sm:$0xf0] }
  0x56   :  { %1383 = vmatpush.bf16.msra.mxu2 %v2002_v41  ;;  %v2431_v21 = vld [vmem:[#allocation5 + $0x470] sm:$0xf0]  ;;  %v2306_v24 = vor.u32 %v2763_v18, %v2303_v19  ;;  %v2759_v30 = vld [vmem:[#allocation5 + $0x344] sm:$0xf]  ;;  %v2117_v17 = vld [vmem:[#allocation5 + $0x1e8] sm:$0xf]  ;;  %v2246_v19 = vor.u32 %v2750_v6, %v2245_v5 }
  0x57   :  { %1391 = vmatpush.bf16.msra.mxu0 %v2226_v46  ;;  %v2559_v26 = vld [vmem:[#allocation5 + $0x570] sm:$0xf0]  ;;  %v2434_v28 = vor.u32 %v2795_v20, %v2431_v21  ;;  %v2791_v32 = vld [vmem:[#allocation5 + $0x444] sm:$0xf]  ;;  %v2718_v18 = vld [vmem:[#allocation5 + $0x1f4] sm:$0xf0] }
  0x58   :  { %1405 = vmatpush.bf16.msra.mxu1 %v2354_v47  ;;  %v2159_v29 = vld [vmem:[#allocation5 + $0x250] sm:$0xf0]  ;;  %v2562_v34 = vor.u32 %v2827_v25, %v2559_v26  ;;  %v2823_v38 = vld [vmem:[#allocation5 + $0x544] sm:$0xf]  ;;  %v1973_v21 = vld [vmem:[#allocation5 + $0xc8] sm:$0xf]  ;;  %v2118_v26 = vor.u32 %v2718_v18, %v2117_v17 }
  0x59   :  { %1419 = vmatpush.bf16.msra.mxu3 %v2482_v52  ;;  %1384 = vmatmul.bf16.vlgmr.msra.gmra.mxu2 %v3021_v8  ;;  %v2287_v31 = vld [vmem:[#allocation5 + $0x350] sm:$0xf0]  ;;  %v2162_v35 = vor.u32 %v2727_v27, %v2159_v29  ;;  %v2723_v40 = vld [vmem:[#allocation5 + $0x224] sm:$0xf]  ;;  %v2746_v25 = vld [vmem:[#allocation5 + $0x2d4] sm:$0xf0] }
  0x5a   :  { %1432 = vmatpush.bf16.msrb.mxu2 %v2626_v45  ;;  %v2415_v33 = vld [vmem:[#allocation5 + $0x450] sm:$0xf0]  ;;  %v2290_v36 = vor.u32 %v2759_v30, %v2287_v31  ;;  %v2755_v44 = vld [vmem:[#allocation5 + $0x324] sm:$0xf]  ;;  %v2357_v27 = vld [vmem:[#allocation5 + $0x3c8] sm:$0xf] }
  0x5b   :  { %1392 = vmatpush.bf16.msra.mxu0 %v2210_v62  ;;  %v2543_v39 = vld [vmem:[#allocation5 + $0x550] sm:$0xf0]  ;;  %v2418_v41 = vor.u32 %v2791_v32, %v2415_v33  ;;  %v2787_v46 = vld [vmem:[#allocation5 + $0x424] sm:$0xf]  ;;  %v2101_v30 = vld [vmem:[#allocation5 + $0x1c8] sm:$0xf] }
  0x5c   :  { %1406 = vmatpush.bf16.msra.mxu1 %v2338_v63  ;;  %v2143_v43 = vld [vmem:[#allocation5 + $0x230] sm:$0xf0]  ;;  %v2546_v48 = vor.u32 %v2823_v38, %v2543_v39  ;;  %v2819_v49 = vld [vmem:[#allocation5 + $0x524] sm:$0xf]  ;;  %v2714_v31 = vld [vmem:[#allocation5 + $0x1d4] sm:$0xf0] }
  0x5d   :  { %1420 = vmatpush.bf16.msra.mxu3 %v2466_v3  ;;  %v2271_v45 = vld [vmem:[#allocation5 + $0x330] sm:$0xf0]  ;;  %v2146_v52 = vor.u32 %v2723_v40, %v2143_v43  ;;  %v2719_v55 = vld [vmem:[#allocation5 + $0x204] sm:$0xf]  ;;  %v1957_v33 = vld [vmem:[#allocation5 + $0xa8] sm:$0xf]  ;;  %v2102_v39 = vor.u32 %v2714_v31, %v2101_v30 }
  0x5e   :  { %1433 = vmatpush.bf16.msrb.mxu2 %v2610_v61  ;;  %v2399_v47 = vld [vmem:[#allocation5 + $0x430] sm:$0xf0]  ;;  %v2274_v53 = vor.u32 %v2755_v44, %v2271_v45  ;;  %v2751_v57 = vld [vmem:[#allocation5 + $0x304] sm:$0xf]  ;;  %v2742_v38 = vld [vmem:[#allocation5 + $0x2b4] sm:$0xf0] }
  0x5f   :  { %1393 = vmatpush.bf16.msra.mxu0 %v2194_v11  ;;  %v2527_v51 = vld [vmem:[#allocation5 + $0x530] sm:$0xf0]  ;;  %v2402_v59 = vor.u32 %v2787_v46, %v2399_v47  ;;  %v2783_v62 = vld [vmem:[#allocation5 + $0x404] sm:$0xf]  ;;  %v2341_v40 = vld [vmem:[#allocation5 + $0x3a8] sm:$0xf] }
  0x60   :  { %1407 = vmatpush.bf16.msra.mxu1 %v2322_v12  ;;  %v2127_v56 = vld [vmem:[#allocation5 + $0x210] sm:$0xf0]  ;;  %v2847_v2 = vld [vmem:[#allocation5 + $0x604] sm:$0xf]  ;;  %v2530_v3 = vor.u32 %v2819_v49, %v2527_v51  ;;  %v2085_v44 = vld [vmem:[#allocation5 + $0x1a8] sm:$0xf] }
  0x61   :  { %1421 = vmatpush.bf16.msra.mxu3 %v2450_v16  ;;  %v2255_v61 = vld [vmem:[#allocation5 + $0x310] sm:$0xf0]  ;;  %v2130_v7 = vor.u32 %v2719_v55, %v2127_v56  ;;  %v2710_v45 = vld [vmem:[#allocation5 + $0x1b4] sm:$0xf0]  ;;  %v1941_v47 = vld [vmem:[#allocation5 + $0x88] sm:$0xf] }
  0x62   :  { %1434 = vmatpush.bf16.msrb.mxu2 %v2594_v10  ;;  %v2383_v63 = vld [vmem:[#allocation5 + $0x410] sm:$0xf0]  ;;  %v2258_v9 = vor.u32 %v2751_v57, %v2255_v61  ;;  %v2815_v10 = vld [vmem:[#allocation5 + $0x504] sm:$0xf]  ;;  %v2197_v51 = vld [vmem:[#allocation5 + $0x288] sm:$0xf] }
  0x63   :  { %1394 = vmatpush.bf16.msra.mxu0 %v2178_v23  ;;  %v2639_v4 = vld [vmem:[#allocation5 + $0x610] sm:$0xf0]  ;;  %v2386_v12 = vor.u32 %v2783_v62, %v2383_v63  ;;  %v2374_v23 = vor.u32 %v2782_v15, %v2373_v14  ;;  %v2325_v55 = vld [vmem:[#allocation5 + $0x388] sm:$0xf]  ;;  %v2770_v56 = vld [vmem:[#allocation5 + $0x394] sm:$0xf0] }
  0x64   :  { %1408 = vmatpush.bf16.msra.mxu1 %v2306_v24  ;;  %v2511_v11 = vld [vmem:[#allocation5 + $0x510] sm:$0xf0]  ;;  %v2642_v16 = vor.u32 %v2847_v2, %v2639_v4  ;;  %v2229_v24 = vld [vmem:[#allocation5 + $0x2c8] sm:$0xf]  ;;  %v2706_v61 = vld [vmem:[#allocation5 + $0x194] sm:$0xf0]  ;;  %v2326_v1 = vor.u32 %v2770_v56, %v2325_v55 }
  0x65   :  { %1422 = vmatpush.bf16.msra.mxu3 %v2434_v28  ;;  %v2514_v20 = vor.u32 %v2815_v10, %v2511_v11  ;;  %v2778_v28 = vld [vmem:[#allocation5 + $0x3d4] sm:$0xf0]  ;;  %v2230_v32 = vor.u32 %v2746_v25, %v2229_v24  ;;  %v1925_v63 = vld [vmem:[#allocation5 + $0x68] sm:$0xf]  ;;  %v2684_v55 = vld [vmem:[#allocation5 + $0xec] sm:$0xf] }
  0x66   :  { %1435 = vmatpush.bf16.msrb.mxu2 %v2578_v22  ;;  %v2682_v22 = vld [vmem:[#allocation5 + $0xd4] sm:$0xf0]  ;;  %v2181_v2 = vld [vmem:[#allocation5 + $0x268] sm:$0xf]  ;;  %v1991_v56 = vld [vmem:[#allocation5 + $0xf8] sm:$0xf0] }
  0x67   :  { %1395 = vmatpush.bf16.msra.mxu0 %v2162_v35  ;;  %v1974_v29 = vor.u32 %v2682_v22, %v1973_v21  ;;  %v2358_v35 = vor.u32 %v2778_v28, %v2357_v27  ;;  %v2670_v0 = vld [vmem:[#allocation5 + $0x74] sm:$0xf0]  ;;  %v2309_v5 = vld [vmem:[#allocation5 + $0x368] sm:$0xf] }
  0x68   :  { %1409 = vmatpush.bf16.msra.mxu1 %v2290_v36  ;;  %v2213_v36 = vld [vmem:[#allocation5 + $0x2a8] sm:$0xf]  ;;  %v2766_v6 = vld [vmem:[#allocation5 + $0x374] sm:$0xf0] }
  0x69   :  { %1423 = vmatpush.bf16.msra.mxu3 %v2418_v41  ;;  %v2774_v41 = vld [vmem:[#allocation5 + $0x3b4] sm:$0xf0]  ;;  %v2214_v46 = vor.u32 %v2742_v38, %v2213_v36  ;;  %v2310_v14 = vor.u32 %v2766_v6, %v2309_v5  ;;  %v2165_v15 = vld [vmem:[#allocation5 + $0x248] sm:$0xf]  ;;  %v1994_v6 = vor.u32 %v2684_v55, %v1991_v56 }
  0x6a   :  { %1436 = vmatpush.bf16.msrb.mxu2 %v2562_v34  ;;  %v2678_v34 = vld [vmem:[#allocation5 + $0xb4] sm:$0xf0]  ;;  %v2342_v49 = vor.u32 %v2774_v41, %v2341_v40  ;;  %v2293_v18 = vld [vmem:[#allocation5 + $0x348] sm:$0xf] }
  0x6b   :  { %1396 = vmatpush.bf16.msra.mxu0 %v2146_v52  ;;  %v1958_v43 = vor.u32 %v2678_v34, %v1957_v33  ;;  %v2738_v52 = vld [vmem:[#allocation5 + $0x294] sm:$0xf0]  ;;  %v2037_v21 = vld [vmem:[#allocation5 + $0x148] sm:$0xf] }
  0x6c   :  { %1410 = vmatpush.bf16.msra.mxu1 %v2274_v53  ;;  %v2086_v53 = vor.u32 %v2710_v45, %v2085_v44  ;;  %v2198_v62 = vor.u32 %v2738_v52, %v2197_v51  ;;  %v2702_v10 = vld [vmem:[#allocation5 + $0x174] sm:$0xf0]  ;;  %v1893_v24 = vld [vmem:[#allocation5 + $0x28] sm:$0xf] }
  0x6d   :  { %1424 = vmatpush.bf16.msra.mxu3 %v2402_v59  ;;  %v2069_v59 = vld [vmem:[#allocation5 + $0x188] sm:$0xf]  ;;  %v2698_v22 = vld [vmem:[#allocation5 + $0x154] sm:$0xf0] }
  0x6e   :  { %1437 = vmatpush.bf16.msrb.mxu2 %v2546_v48  ;;  %v2674_v48 = vld [vmem:[#allocation5 + $0x94] sm:$0xf0]  ;;  %v2070_v4 = vor.u32 %v2706_v61, %v2069_v59  ;;  %v2149_v27 = vld [vmem:[#allocation5 + $0x228] sm:$0xf] }
  0x6f   :  { %1397 = vmatpush.bf16.msra.mxu0 %v2130_v7  ;;  %v1942_v57 = vor.u32 %v2674_v48, %v1941_v47  ;;  %v1926_v7 = vor.u32 %v2670_v0, %v1925_v63  ;;  %v2662_v25 = vld [vmem:[#allocation5 + $0x34] sm:$0xf0]  ;;  %v2277_v30 = vld [vmem:[#allocation5 + $0x328] sm:$0xf] }
  0x70   :  { %1411 = vmatpush.bf16.msra.mxu1 %v2258_v9  ;;  %v2053_v9 = vld [vmem:[#allocation5 + $0x168] sm:$0xf]  ;;  %v2726_v28 = vld [vmem:[#allocation5 + $0x234] sm:$0xf0] }
  0x71   :  { %1425 = vmatpush.bf16.msra.mxu3 %v2386_v12  ;;  %v1909_v12 = vld [vmem:[#allocation5 + $0x48] sm:$0xf]  ;;  %v2054_v17 = vor.u32 %v2702_v10, %v2053_v9  ;;  %v2758_v31 = vld [vmem:[#allocation5 + $0x334] sm:$0xf0]  ;;  %v2150_v36 = vor.u32 %v2726_v28, %v2149_v27  ;;  %v2680_v9 = vld [vmem:[#allocation5 + $0xcc] sm:$0xf] }
  0x72   :  { %1438 = vmatpush.bf16.msrb.mxu2 %v2530_v3  ;;  %1398 = vmatmul.bf16.vlgmr.msra.gmra.mxu0 %v3013_v54  ;;  %v2734_v3 = vld [vmem:[#allocation5 + $0x274] sm:$0xf0]  ;;  %v2021_v33 = vld [vmem:[#allocation5 + $0x128] sm:$0xf]  ;;  %v2278_v41 = vor.u32 %v2758_v31, %v2277_v30  ;;  %v1975_v10 = vld [vmem:[#allocation5 + $0xd8] sm:$0xf0] }
  0x73   :  { %1488 = vmatpush.bf16.msrb.mxu0 %v2246_v19  ;;  %1412 = vmatmul.bf16.vlgmr.msra.gmra.mxu1 %v3017_v60  ;;  %v2182_v11 = vor.u32 %v2734_v3, %v2181_v2  ;;  %v2762_v19 = vld [vmem:[#allocation5 + $0x354] sm:$0xf0]  ;;  %v2133_v44 = vld [vmem:[#allocation5 + $0x208] sm:$0xf]  ;;  %v2716_v3 = vld [vmem:[#allocation5 + $0x1ec] sm:$0xf] }
  0x74   :  { %1460 = vmatpush.bf16.msrb.mxu1 %v1990_v13  ;;  %1426 = vmatmul.bf16.vlgmr.msra.gmra.mxu3 %v3029_v37  ;;  %v2666_v13 = vld [vmem:[#allocation5 + $0x54] sm:$0xf0]  ;;  %v2629_v61 = vld [vmem:[#allocation5 + $0x5e8] sm:$0xf]  ;;  %v2087_v30 = vld [vmem:[#allocation5 + $0x1b8] sm:$0xf0] }
  0x75   :  { %1453 = vmatpush.bf16.msrb.mxu3 %v2642_v16  ;;  %v2730_v16 = vld [vmem:[#allocation5 + $0x254] sm:$0xf0]  ;;  %v2485_v63 = vld [vmem:[#allocation5 + $0x4c8] sm:$0xf] }
  0x76   :  { %1439 = vmatpush.bf16.msrb.mxu2 %v2514_v20  ;;  %v1910_v20 = vor.u32 %v2666_v13, %v1909_v12  ;;  %v2694_v34 = vld [vmem:[#allocation5 + $0x134] sm:$0xf0]  ;;  %v2613_v13 = vld [vmem:[#allocation5 + $0x5c8] sm:$0xf] }
  0x77   :  { %1489 = vmatpush.bf16.msrb.mxu0 %v2230_v32  ;;  %v1894_v32 = vor.u32 %v2662_v25, %v1893_v24  ;;  %v2658_v38 = vld [vmem:[#allocation5 + $0x14] sm:$0xf0]  ;;  %v2022_v47 = vor.u32 %v2694_v34, %v2021_v33  ;;  %v2597_v25 = vld [vmem:[#allocation5 + $0x5a8] sm:$0xf]  ;;  %v2672_v33 = vld [vmem:[#allocation5 + $0x8c] sm:$0xf] }
  0x78   :  { %1461 = vmatpush.bf16.msrb.mxu1 %v1974_v29  ;;  %v2038_v29 = vor.u32 %v2698_v22, %v2037_v21  ;;  %v2814_v40 = vld [vmem:[#allocation5 + $0x4f4] sm:$0xf0]  ;;  %v2676_v21 = vld [vmem:[#allocation5 + $0xac] sm:$0xf]  ;;  %v1959_v22 = vld [vmem:[#allocation5 + $0xb8] sm:$0xf0] }
  0x79   :  { %1474 = vmatpush.bf16.msra.mxu3 %v2118_v26  ;;  %1440 = vmatmul.bf16.vlgmr.msrb.gmra.mxu2 %v3031_v42  ;;  %v2294_v26 = vor.u32 %v2762_v19, %v2293_v18  ;;  %v2722_v45 = vld [vmem:[#allocation5 + $0x214] sm:$0xf0]  ;;  %v2103_v18 = vld [vmem:[#allocation5 + $0x1d8] sm:$0xf0]  ;;  %v1978_v19 = vor.u32 %v2680_v9, %v1975_v10  ;;  %v2453_v27 = vld [vmem:[#allocation5 + $0x488] sm:$0xf]  ;;  %v1962_v31 = vor.u32 %v2676_v21, %v1959_v22 }
  0x7a   :  { %1502 = vmatpush.bf16.msra.mxu2 %v2374_v23  ;;  %v2166_v23 = vor.u32 %v2730_v16, %v2165_v15  ;;  %v2754_v48 = vld [vmem:[#allocation5 + $0x314] sm:$0xf0]  ;;  %v2134_v59 = vor.u32 %v2722_v45, %v2133_v44  ;;  %v2469_v15 = vld [vmem:[#allocation5 + $0x4a8] sm:$0xf]  ;;  %v1943_v34 = vld [vmem:[#allocation5 + $0x98] sm:$0xf0] }
  0x7b   :  { %1490 = vmatpush.bf16.msrb.mxu0 %v2214_v46  ;;  %v2261_v46 = vld [vmem:[#allocation5 + $0x308] sm:$0xf]  ;;  %v2850_v51 = vld [vmem:[#allocation5 + $0x614] sm:$0xf0]  ;;  %v2071_v44 = vld [vmem:[#allocation5 + $0x198] sm:$0xf0]  ;;  %v1946_v45 = vor.u32 %v2672_v33, %v1943_v34 }
  0x7c   :  { %1462 = vmatpush.bf16.msrb.mxu1 %v1958_v43  ;;  %v2005_v43 = vld [vmem:[#allocation5 + $0x108] sm:$0xf]  ;;  %v2262_v0 = vor.u32 %v2754_v48, %v2261_v46  ;;  %v2806_v16 = vld [vmem:[#allocation5 + $0x4b4] sm:$0xf0]  ;;  %v1927_v48 = vld [vmem:[#allocation5 + $0x78] sm:$0xf0] }
  0x7d   :  { %1475 = vmatpush.bf16.msra.mxu3 %v2102_v39  ;;  %v2501_v39 = vld [vmem:[#allocation5 + $0x4e8] sm:$0xf]  ;;  %v2802_v28 = vld [vmem:[#allocation5 + $0x494] sm:$0xf0]  ;;  %v2039_v9 = vld [vmem:[#allocation5 + $0x158] sm:$0xf0] }
  0x7e   :  { %1503 = vmatpush.bf16.msra.mxu2 %v2358_v35  ;;  %v1877_v35 = vld [vmem:[#allocation5 + $0x8] sm:$0xf]  ;;  %v2794_v56 = vld [vmem:[#allocation5 + $0x454] sm:$0xf0]  ;;  %v2023_v21 = vld [vmem:[#allocation5 + $0x138] sm:$0xf0] }
  0x7f   :  { %1491 = vmatpush.bf16.msrb.mxu0 %v2198_v62  ;;  %v1878_v52 = vor.u32 %v2658_v38, %v1877_v35  ;;  %v2846_v62 = vld [vmem:[#allocation5 + $0x5f4] sm:$0xf0]  ;;  %v2454_v35 = vor.u32 %v2802_v28, %v2453_v27  ;;  %v2581_v38 = vld [vmem:[#allocation5 + $0x588] sm:$0xf]  ;;  %v2656_v27 = vld [vmem:[#allocation5 + $0xc] sm:$0xf] }
  0x80   :  { %1463 = vmatpush.bf16.msrb.mxu1 %v1942_v57  ;;  %v2502_v57 = vor.u32 %v2814_v40, %v2501_v39  ;;  %v2834_v39 = vld [vmem:[#allocation5 + $0x594] sm:$0xf0]  ;;  %v2437_v40 = vld [vmem:[#allocation5 + $0x468] sm:$0xf]  ;;  %v1879_v28 = vld [vmem:[#allocation5 + $0x18] sm:$0xf0] }
  0x81   :  { %1476 = vmatpush.bf16.msra.mxu3 %v2086_v53  ;;  %v2690_v53 = vld [vmem:[#allocation5 + $0x114] sm:$0xf0]  ;;  %v2582_v46 = vor.u32 %v2834_v39, %v2581_v38  ;;  %v2421_v55 = vld [vmem:[#allocation5 + $0x448] sm:$0xf]  ;;  %v2375_v33 = vld [vmem:[#allocation5 + $0x3f8] sm:$0xf0]  ;;  %v1882_v39 = vor.u32 %v2656_v27, %v1879_v28 }
  0x82   :  { %1504 = vmatpush.bf16.msra.mxu2 %v2342_v49  ;;  %v2645_v49 = vld [vmem:[#allocation5 + $0x608] sm:$0xf]  ;;  %v2006_v5 = vor.u32 %v2690_v53, %v2005_v43  ;;  %v2704_v43 = vld [vmem:[#allocation5 + $0x18c] sm:$0xf]  ;;  %v2830_v53 = vld [vmem:[#allocation5 + $0x574] sm:$0xf0] }
  0x83   :  { %1492 = vmatpush.bf16.msrb.mxu0 %v2182_v11  ;;  %v2646_v2 = vor.u32 %v2850_v51, %v2645_v49  ;;  %v2074_v51 = vor.u32 %v2704_v43, %v2071_v44  ;;  %v2744_v38 = vld [vmem:[#allocation5 + $0x2cc] sm:$0xf]  ;;  %v2007_v43 = vld [vmem:[#allocation5 + $0x118] sm:$0xf0] }
  0x84   :  { %1464 = vmatpush.bf16.msrb.mxu1 %v1926_v7  ;;  %2652 = vmatmul.msk.bf16.vlgmr.msrb.gmra.mxu3 %vm1260_vm0, %v3025_v50  ;;  %v2630_v7 = vor.u32 %v2846_v62, %v2629_v61  ;;  %v2311_v28 = vld [vmem:[#allocation5 + $0x378] sm:$0xf0] }
  0x85   :  { %1477 = vmatpush.bf16.msra.mxu3 %v2070_v4  ;;  %v2119_v4 = vld [vmem:[#allocation5 + $0x1f8] sm:$0xf0] }
  0x86   :  { %1505 = vmatpush.bf16.msra.mxu2 %v2326_v1  ;;  %v2810_v1 = vld [vmem:[#allocation5 + $0x4d4] sm:$0xf0]  ;;  %v2122_v12 = vor.u32 %v2716_v3, %v2119_v4  ;;  %v2549_v3 = vld [vmem:[#allocation5 + $0x548] sm:$0xf] }
  0x87   :  { %1493 = vmatpush.bf16.msrb.mxu0 %v2166_v23  ;;  %v2486_v11 = vor.u32 %v2810_v1, %v2485_v63  ;;  %v2470_v23 = vor.u32 %v2806_v16, %v2469_v15  ;;  %v2664_v63 = vld [vmem:[#allocation5 + $0x4c] sm:$0xf]  ;;  %v2422_v1 = vor.u32 %v2794_v56, %v2421_v55  ;;  %v2826_v4 = vld [vmem:[#allocation5 + $0x554] sm:$0xf0]  ;;  %v2533_v16 = vld [vmem:[#allocation5 + $0x528] sm:$0xf] }
  0x88   :  { %1465 = vmatpush.bf16.msrb.mxu1 %v1910_v20  ;;  %v2808_v55 = vld [vmem:[#allocation5 + $0x4cc] sm:$0xf]  ;;  %v2487_v56 = vld [vmem:[#allocation5 + $0x4d8] sm:$0xf0] }
  0x89   :  { %1478 = vmatpush.bf16.msra.mxu3 %v2054_v17  ;;  %v2712_v17 = vld [vmem:[#allocation5 + $0x1cc] sm:$0xf] }
  0x8a   :  { %1506 = vmatpush.bf16.msra.mxu2 %v2310_v14  ;;  %v2842_v14 = vld [vmem:[#allocation5 + $0x5d4] sm:$0xf0]  ;;  %v2106_v24 = vor.u32 %v2712_v17, %v2103_v18  ;;  %v2389_v18 = vld [vmem:[#allocation5 + $0x408] sm:$0xf] }
  0x8b   :  { %1494 = vmatpush.bf16.msrb.mxu0 %v2150_v36  ;;  %v2614_v20 = vor.u32 %v2842_v14, %v2613_v13  ;;  %v1895_v13 = vld [vmem:[#allocation5 + $0x38] sm:$0xf0]  ;;  %v2822_v17 = vld [vmem:[#allocation5 + $0x534] sm:$0xf0] }
  0x8c   :  { %1466 = vmatpush.bf16.msrb.mxu1 %v1894_v32 }
  0x8d   :  { %1479 = vmatpush.bf16.msra.mxu3 %v2038_v29  ;;  %v2708_v29 = vld [vmem:[#allocation5 + $0x1ac] sm:$0xf] }
  0x8e   :  { %1507 = vmatpush.bf16.msra.mxu2 %v2294_v26  ;;  %v2838_v26 = vld [vmem:[#allocation5 + $0x5b4] sm:$0xf0]  ;;  %v2090_v36 = vor.u32 %v2708_v29, %v2087_v30 }
  0x8f   :  { %1495 = vmatpush.bf16.msrb.mxu0 %v2134_v59  ;;  %v2598_v32 = vor.u32 %v2838_v26, %v2597_v25  ;;  %v2055_v59 = vld [vmem:[#allocation5 + $0x178] sm:$0xf0]  ;;  %v2534_v25 = vor.u32 %v2822_v17, %v2533_v16  ;;  %v2517_v26 = vld [vmem:[#allocation5 + $0x508] sm:$0xf] }
  0x90   :  { %1467 = vmatpush.bf16.msrb.mxu1 %v1878_v52  ;;  %v2565_v52 = vld [vmem:[#allocation5 + $0x568] sm:$0xf]  ;;  %v2327_v17 = vld [vmem:[#allocation5 + $0x398] sm:$0xf0] }
  0x91   :  { %1480 = vmatpush.bf16.msra.mxu3 %v2022_v47  ;;  %v2668_v47 = vld [vmem:[#allocation5 + $0x6c] sm:$0xf]  ;;  %v2566_v62 = vor.u32 %v2830_v53, %v2565_v52  ;;  %v2359_v53 = vld [vmem:[#allocation5 + $0x3d8] sm:$0xf0] }
  0x92   :  { %1508 = vmatpush.bf16.msra.mxu2 %v2278_v41  ;;  %1496 = vmatmul.bf16.vlgmr.msrb.gmra.mxu0 %v3013_v54  ;;  %v2798_v41 = vld [vmem:[#allocation5 + $0x474] sm:$0xf0]  ;;  %v1930_v61 = vor.u32 %v2668_v47, %v1927_v48 }
  0x93   :  { %1551 = vmatpush.bf16.msra.mxu0 %v2646_v2  ;;  %1468 = vmatmul.bf16.vlgmr.msrb.gmra.mxu1 %v3015_v58  ;;  %v2438_v49 = vor.u32 %v2798_v41, %v2437_v40  ;;  %v2231_v40 = vld [vmem:[#allocation5 + $0x2d8] sm:$0xf0]  ;;  %v2688_v41 = vld [vmem:[#allocation5 + $0x10c] sm:$0xf] }
  0x94   :  { %1516 = vmatpush.bf16.msra.mxu1 %v2502_v57  ;;  %v2700_v57 = vld [vmem:[#allocation5 + $0x16c] sm:$0xf]  ;;  %v2010_v52 = vor.u32 %v2688_v41, %v2007_v43  ;;  %v2423_v43 = vld [vmem:[#allocation5 + $0x458] sm:$0xf0] }
  0x95   :  { %1481 = vmatpush.bf16.msra.mxu3 %v2006_v5  ;;  %v2058_v2 = vor.u32 %v2700_v57, %v2055_v59  ;;  %v2405_v5 = vld [vmem:[#allocation5 + $0x428] sm:$0xf]  ;;  %v2740_v59 = vld [vmem:[#allocation5 + $0x2ac] sm:$0xf] }
  0x96   :  { %1509 = vmatpush.bf16.msra.mxu2 %v2262_v0  ;;  %v1911_v0 = vld [vmem:[#allocation5 + $0x58] sm:$0xf0]  ;;  %v2792_v41 = vld [vmem:[#allocation5 + $0x44c] sm:$0xf] }
  0x97   :  { %1572 = vmatpush.bf16.msrb.mxu0 %v2122_v12  ;;  %v1914_v10 = vor.u32 %v2664_v63, %v1911_v0  ;;  %v2660_v12 = vld [vmem:[#allocation5 + $0x2c] sm:$0xf]  ;;  %v2615_v63 = vld [vmem:[#allocation5 + $0x5d8] sm:$0xf0] }
  0x98   :  { %1517 = vmatpush.bf16.msra.mxu1 %v2486_v11  ;;  %1482 = vmatmul.bf16.vlgmr.msra.gmra.mxu3 %v3021_v8  ;;  %v2550_v11 = vor.u32 %v2826_v4, %v2549_v3  ;;  %v1898_v22 = vor.u32 %v2660_v12, %v1895_v13  ;;  %v2343_v4 = vld [vmem:[#allocation5 + $0x3b8] sm:$0xf0] }
  0x99   :  { %1530 = vmatpush.bf16.msrb.mxu3 %v2630_v7  ;;  %1510 = vmatmul.bf16.vlgmr.msra.gmra.mxu2 %v3017_v60  ;;  %v2696_v7 = vld [vmem:[#allocation5 + $0x14c] sm:$0xf]  ;;  %v2599_v12 = vld [vmem:[#allocation5 + $0x5b8] sm:$0xf0] }
  0x9a   :  { %1558 = vmatpush.bf16.msrb.mxu2 %v1994_v6  ;;  %v2790_v6 = vld [vmem:[#allocation5 + $0x434] sm:$0xf0]  ;;  %v2042_v15 = vor.u32 %v2696_v7, %v2039_v9  ;;  %v2736_v9 = vld [vmem:[#allocation5 + $0x28c] sm:$0xf] }
  0x9b   :  { %1573 = vmatpush.bf16.msrb.mxu0 %v2106_v24  ;;  %v2406_v14 = vor.u32 %v2790_v6, %v2405_v5  ;;  %v2247_v24 = vld [vmem:[#allocation5 + $0x2f8] sm:$0xf0]  ;;  %v2804_v5 = vld [vmem:[#allocation5 + $0x4ac] sm:$0xf] }
  0x9c   :  { %1518 = vmatpush.bf16.msra.mxu1 %v2470_v23  ;;  %v2748_v23 = vld [vmem:[#allocation5 + $0x2ec] sm:$0xf]  ;;  %v2471_v6 = vld [vmem:[#allocation5 + $0x4b8] sm:$0xf0] }
  0x9d   :  { %1531 = vmatpush.bf16.msrb.mxu3 %v2614_v20  ;;  %v2692_v20 = vld [vmem:[#allocation5 + $0x12c] sm:$0xf]  ;;  %v2250_v34 = vor.u32 %v2748_v23, %v2247_v24 }
  0x9e   :  { %1559 = vmatpush.bf16.msrb.mxu2 %v1978_v19  ;;  %v2786_v19 = vld [vmem:[#allocation5 + $0x414] sm:$0xf0]  ;;  %v2026_v30 = vor.u32 %v2692_v20, %v2023_v21  ;;  %v2732_v21 = vld [vmem:[#allocation5 + $0x26c] sm:$0xf] }
  0x9f   :  { %1574 = vmatpush.bf16.msrb.mxu0 %v2090_v36  ;;  %v2390_v29 = vor.u32 %v2786_v19, %v2389_v18  ;;  %v2503_v36 = vld [vmem:[#allocation5 + $0x4f8] sm:$0xf0]  ;;  %v2800_v18 = vld [vmem:[#allocation5 + $0x48c] sm:$0xf] }
  0xa0   :  { %1519 = vmatpush.bf16.msra.mxu1 %v2454_v35  ;;  %v2812_v35 = vld [vmem:[#allocation5 + $0x4ec] sm:$0xf]  ;;  %v2455_v19 = vld [vmem:[#allocation5 + $0x498] sm:$0xf0] }
  0xa1   :  { %1532 = vmatpush.bf16.msrb.mxu3 %v2598_v32  ;;  %v2780_v32 = vld [vmem:[#allocation5 + $0x3ec] sm:$0xf]  ;;  %v2506_v48 = vor.u32 %v2812_v35, %v2503_v36 }
  0xa2   :  { %1560 = vmatpush.bf16.msrb.mxu2 %v1962_v31  ;;  %2653 = vmatmul.msk.bf16.vlgmr.msra.gmra.mxu0 %vm1260_vm0, %v3025_v50  ;;  %v2818_v31 = vld [vmem:[#allocation5 + $0x514] sm:$0xf0]  ;;  %v2378_v47 = vor.u32 %v2780_v32, %v2375_v33  ;;  %v2832_v23 = vld [vmem:[#allocation5 + $0x58c] sm:$0xf] }
  0xa3   :  { %1575 = vmatpush.bf16.msrb.mxu0 %v2074_v51  ;;  %v2518_v44 = vor.u32 %v2818_v31, %v2517_v26  ;;  %v2234_v51 = vor.u32 %v2744_v38, %v2231_v40  ;;  %v2764_v26 = vld [vmem:[#allocation5 + $0x36c] sm:$0xf]  ;;  %v2295_v40 = vld [vmem:[#allocation5 + $0x358] sm:$0xf0] }
  0xa4   :  { %1520 = vmatpush.bf16.msra.mxu1 %v2438_v49  ;;  %v2776_v49 = vld [vmem:[#allocation5 + $0x3cc] sm:$0xf]  ;;  %v2314_v35 = vor.u32 %v2764_v26, %v2311_v28 }
  0xa5   :  { %1533 = vmatpush.bf16.msrb.mxu3 %v2582_v46  ;;  %v2631_v46 = vld [vmem:[#allocation5 + $0x5f8] sm:$0xf0]  ;;  %v2362_v0 = vor.u32 %v2776_v49, %v2359_v53  ;;  %v2728_v32 = vld [vmem:[#allocation5 + $0x24c] sm:$0xf] }
  0xa6   :  { %1561 = vmatpush.bf16.msrb.mxu2 %v1946_v45  ;;  %v2844_v45 = vld [vmem:[#allocation5 + $0x5ec] sm:$0xf] }
  0xa7   :  { %1576 = vmatpush.bf16.msrb.mxu0 %v2058_v2  ;;  %v2634_v57 = vor.u32 %v2844_v45, %v2631_v46  ;;  %v2772_v2 = vld [vmem:[#allocation5 + $0x3ac] sm:$0xf]  ;;  %v2151_v46 = vld [vmem:[#allocation5 + $0x238] sm:$0xf0] }
  0xa8   :  { %1521 = vmatpush.bf16.msra.mxu1 %v2422_v1  ;;  %v2490_v1 = vor.u32 %v2808_v55, %v2487_v56  ;;  %v2346_v13 = vor.u32 %v2772_v2, %v2343_v4  ;;  %v2828_v33 = vld [vmem:[#allocation5 + $0x56c] sm:$0xf]  ;;  %v2279_v55 = vld [vmem:[#allocation5 + $0x338] sm:$0xf0] }
  0xa9   :  { %1534 = vmatpush.bf16.msrb.mxu3 %v2566_v62  ;;  %v2840_v62 = vld [vmem:[#allocation5 + $0x5cc] sm:$0xf]  ;;  %v2647_v2 = vld [vmem:[#allocation5 + $0x618] sm:$0xf0] }
  0xaa   :  { %1562 = vmatpush.bf16.msrb.mxu2 %v1930_v61  ;;  %v2215_v61 = vld [vmem:[#allocation5 + $0x2b8] sm:$0xf0]  ;;  %v2618_v7 = vor.u32 %v2840_v62, %v2615_v63  ;;  %v2760_v38 = vld [vmem:[#allocation5 + $0x34c] sm:$0xf] }
  0xab   :  { %1577 = vmatpush.bf16.msrb.mxu0 %v2042_v15  ;;  %v2218_v3 = vor.u32 %v2740_v59, %v2215_v61  ;;  %v2768_v15 = vld [vmem:[#allocation5 + $0x38c] sm:$0xf]  ;;  %v2298_v49 = vor.u32 %v2760_v38, %v2295_v40  ;;  %v2135_v62 = vld [vmem:[#allocation5 + $0x218] sm:$0xf0]  ;;  %v1688_v40 = vld [vmem:[#allocation7 + $0xc0] sm:$0xff] }
  0xac   :  { %1522 = vmatpush.bf16.msra.mxu1 %v2406_v14  ;;  %v2474_v14 = vor.u32 %v2804_v5, %v2471_v6  ;;  %v2330_v24 = vor.u32 %v2768_v15, %v2327_v17  ;;  %v2724_v45 = vld [vmem:[#allocation5 + $0x22c] sm:$0xf]  ;;  %v1671_v38 = vld [vmem:[#allocation7 + $0x38] sm:$0xff] }
  0xad   :  { %1535 = vmatpush.bf16.msrb.mxu3 %v2550_v11  ;;  %v2836_v11 = vld [vmem:[#allocation5 + $0x5ac] sm:$0xf]  ;;  %v2154_v53 = vor.u32 %v2724_v45, %v2151_v46  ;;  %v1670_v45 = vld [vmem:[#allocation7 + $0x30] sm:$0xff] }
  0xae   :  { %1563 = vmatpush.bf16.msrb.mxu2 %v1914_v10  ;;  %v2199_v10 = vld [vmem:[#allocation5 + $0x298] sm:$0xf0]  ;;  %v2602_v20 = vor.u32 %v2836_v11, %v2599_v12  ;;  %v2788_v56 = vld [vmem:[#allocation5 + $0x42c] sm:$0xf] }
  0xaf   :  { %1578 = vmatpush.bf16.msrb.mxu0 %v2026_v30  ;;  %v2202_v16 = vor.u32 %v2736_v9, %v2199_v10  ;;  %v2439_v30 = vld [vmem:[#allocation5 + $0x478] sm:$0xf0]  ;;  %v2720_v61 = vld [vmem:[#allocation5 + $0x20c] sm:$0xf] }
  0xb0   :  { %1523 = vmatpush.bf16.msra.mxu1 %v2390_v29  ;;  %v2796_v29 = vld [vmem:[#allocation5 + $0x46c] sm:$0xf]  ;;  %v2138_v5 = vor.u32 %v2720_v61, %v2135_v62  ;;  %v2391_v11 = vld [vmem:[#allocation5 + $0x418] sm:$0xf0] }
  0xb1   :  { %1536 = vmatpush.bf16.msrb.mxu3 %v2534_v25  ;;  %v2458_v25 = vor.u32 %v2800_v18, %v2455_v19  ;;  %v2442_v36 = vor.u32 %v2796_v29, %v2439_v30  ;;  %v2820_v63 = vld [vmem:[#allocation5 + $0x52c] sm:$0xf]  ;;  %v1679_v19 = vld [vmem:[#allocation7 + $0x78] sm:$0xff]  ;;  %v1692_v30 = vld [vmem:[#allocation7 + $0xe0] sm:$0xff] }
  0xb2   :  { %1564 = vmatpush.bf16.msrb.mxu2 %v1898_v22  ;;  %v2183_v22 = vld [vmem:[#allocation5 + $0x278] sm:$0xf0]  ;;  %v2752_v6 = vld [vmem:[#allocation5 + $0x30c] sm:$0xf]  ;;  %v1273_v15 = vpop.f32.mrf.mxu0 }
  0xb3   :  { %1524 = vmatmul.bf16.vlgmr.msra.gmra.mxu1 %v3029_v37  ;;  %1579 = vmatpush.bf16.msrb.mxu0 %v2010_v52  ;;  %v2186_v27 = vor.u32 %v2732_v21, %v2183_v22  ;;  %v2756_v52 = vld [vmem:[#allocation5 + $0x32c] sm:$0xf]  ;;  %v1678_v22 = vld [vmem:[#allocation7 + $0x70] sm:$0xff]  ;;  %v1683_v61 = vld [vmem:[#allocation7 + $0x98] sm:$0xff] }
  0xb4   :  { %1586 = vmatpush.bf16.msrb.mxu1 %v2250_v34  ;;  %v2567_v34 = vld [vmem:[#allocation5 + $0x578] sm:$0xf0]  ;;  %v2784_v10 = vld [vmem:[#allocation5 + $0x40c] sm:$0xf] }
  0xb5   :  { %1537 = vmatpush.bf16.msrb.mxu3 %v2518_v44  ;;  %v2570_v44 = vor.u32 %v2828_v33, %v2567_v34  ;;  %v2394_v17 = vor.u32 %v2784_v10, %v2391_v11  ;;  %v1672_v34 = vld [vmem:[#allocation7 + $0x40] sm:$0xff] }
  0xb6   :  { %1565 = vmatpush.bf16.msrb.mxu2 %v1882_v39  ;;  %1580 = vmatmul.bf16.vlgmr.msrb.gmra.mxu0 %v3021_v8  ;;  %v2167_v8 = vld [vmem:[#allocation5 + $0x258] sm:$0xf0]  ;;  %v1287_v21 = vpop.f32.mrf.mxu1 }
  0xb7   :  { %1628 = vmatpush.bf16.msra.mxu0 %v2634_v57  ;;  %v2170_v39 = vor.u32 %v2728_v32, %v2167_v8  ;;  %v2407_v57 = vld [vmem:[#allocation5 + $0x438] sm:$0xf0]  ;;  %v1301_v18 = vpop.f32.mrf.mxu2  ;;  %v1674_v32 = vld [vmem:[#allocation7 + $0x50] sm:$0xff] }
  0xb8   :  { %1587 = vmatpush.bf16.msrb.mxu1 %v2234_v51  ;;  %1538 = vmatmul.bf16.vlgmr.msrb.gmra.mxu3 %v3031_v42  ;;  %v2426_v51 = vor.u32 %v2792_v41, %v2423_v43  ;;  %v2410_v4 = vor.u32 %v2788_v56, %v2407_v57  ;;  %v1687_v41 = vld [vmem:[#allocation7 + $0xb8] sm:$0xff]  ;;  %v1684_v57 = vld [vmem:[#allocation7 + $0xa0] sm:$0xff] }
  0xb9   :  { %1600 = vmatpush.bf16.msra.mxu3 %v2378_v47  ;;  %1566 = vmatmul.bf16.vlgmr.msrb.gmra.mxu2 %v3015_v58  ;;  %v2583_v58 = vld [vmem:[#allocation5 + $0x598] sm:$0xf0]  ;;  %v2824_v47 = vld [vmem:[#allocation5 + $0x54c] sm:$0xf]  ;;  %v1315_v28 = vpop.f32.mrf.mxu3 }
  0xba   :  { %1614 = vmatpush.bf16.msra.mxu2 %v2506_v48  ;;  %v2586_v31 = vor.u32 %v2832_v23, %v2583_v58  ;;  %v2551_v48 = vld [vmem:[#allocation5 + $0x558] sm:$0xf0]  ;;  %v1694_v58 = vld [vmem:[#allocation7 + $0xf0] sm:$0xff]  ;;  %v1275_v26 = vpop.f32.mrf.mxu0 }
  0xbb   :  { %1629 = vmatpush.bf16.msra.mxu0 %v2618_v7  ;;  %v2554_v59 = vor.u32 %v2824_v47, %v2551_v48  ;;  %v2263_v7 = vld [vmem:[#allocation5 + $0x318] sm:$0xf0] }
  0xbc   :  { %1588 = vmatpush.bf16.msrb.mxu1 %v2218_v3  ;;  %v2282_v3 = vor.u32 %v2756_v52, %v2279_v55  ;;  %v1695_v23 = vld [vmem:[#allocation7 + $0xf8] sm:$0xff]  ;;  %v1685_v55 = vld [vmem:[#allocation7 + $0xa8] sm:$0xff] }
  0xbd   :  { %1601 = vmatpush.bf16.msra.mxu3 %v2362_v0  ;;  %v2535_v0 = vld [vmem:[#allocation5 + $0x538] sm:$0xf0] }
  0xbe   :  { %1615 = vmatpush.bf16.msra.mxu2 %v2490_v1  ;;  %v2848_v1 = vld [vmem:[#allocation5 + $0x60c] sm:$0xf]  ;;  %v2538_v9 = vor.u32 %v2820_v63, %v2535_v0  ;;  %v1289_v8 = vpop.f32.mrf.mxu1  ;;  %v1667_v56 = vld [vmem:[#allocation7 + $0x18] sm:$0xff]  ;;  %v1666_v63 = vld [vmem:[#allocation7 + $0x10] sm:$0xff] }
  0xbf   :  { %1630 = vmatpush.bf16.msra.mxu0 %v2602_v20  ;;  %v2650_v12 = vor.u32 %v2848_v1, %v2647_v2  ;;  %v1303_v29 = vpop.f32.mrf.mxu2 }
  0xc0   :  { %1589 = vmatpush.bf16.msrb.mxu1 %v2202_v16  ;;  %v2266_v16 = vor.u32 %v2752_v6, %v2263_v7  ;;  %v1682_v6 = vld [vmem:[#allocation7 + $0x90] sm:$0xff]  ;;  %v1664_v7 = vld [vmem:[#allocation7] sm:$0xff] }
  0xc1   :  { %1602 = vmatpush.bf16.msra.mxu3 %v2346_v13  ;;  %v2816_v13 = vld [vmem:[#allocation5 + $0x50c] sm:$0xf]  ;;  %v1317_v46 = vpop.f32.mrf.mxu3 }
  0xc2   :  { %1616 = vmatpush.bf16.msra.mxu2 %v2474_v14  ;;  %v2519_v14 = vld [vmem:[#allocation5 + $0x518] sm:$0xf0] }
  0xc3   :  { %1631 = vmatpush.bf16.msra.mxu0 %v2586_v31  ;;  %v2522_v20 = vor.u32 %v2816_v13, %v2519_v14  ;;  %v1288_v31 = vadd.f32 %v1287_v21, %v1273_v15 }
  0xc4   :  { %1590 = vmatpush.bf16.msrb.mxu1 %v2186_v27  ;;  %v1675_v27 = vld [vmem:[#allocation7 + $0x58] sm:$0xff] }
  0xc5   :  { %1603 = vmatpush.bf16.msra.mxu3 %v2330_v24  ;;  %v1677_v24 = vld [vmem:[#allocation7 + $0x68] sm:$0xff]  ;;  %v1302_v33 = vadd.f32 %v1301_v18, %v1288_v31 }
  0xc6   :  { %1617 = vmatpush.bf16.msra.mxu2 %v2458_v25  ;;  %v1676_v25 = vld [vmem:[#allocation7 + $0x60] sm:$0xff] }
  0xc7   :  { %1632 = vmatpush.bf16.msra.mxu0 %v2570_v44  ;;  %v1316_v43 = vadd.f32 %v1315_v28, %v1302_v33  ;;  %v1290_v44 = vadd.f32 %v1289_v8, %v1275_v26  ;;  %v1709_v26 = vld [vmem:[#allocation7 + $0x168] sm:$0xff] }
  0xc8   :  { %1591 = vmatpush.bf16.msrb.mxu1 %v2170_v39  ;;  %v1357_v39 = vpop.f32.mrf.mxu2 }
  0xc9   :  { %1604 = vmatpush.bf16.msra.mxu3 %v2314_v35  ;;  %v1304_v52 = vadd.f32 %v1303_v29, %v1290_v44 }
  0xca   :  { %1618 = vmatpush.bf16.msra.mxu2 %v2442_v36  ;;  %v1689_v36 = vld [vmem:[#allocation7 + $0xc8] sm:$0xff] }
  0xcb   :  { %1633 = vmatpush.bf16.msra.mxu0 %v2554_v59  ;;  %v1318_v62 = vadd.f32 %v1317_v46, %v1304_v52  ;;  %v1698_v52 = vld [vmem:[#allocation7 + $0x110] sm:$0xff] }
  0xcc   :  { %1592 = vmatpush.bf16.msrb.mxu1 %v2154_v53  ;;  %v1668_v53 = vld [vmem:[#allocation7 + $0x20] sm:$0xff] }
  0xcd   :  { %1605 = vmatpush.bf16.msra.mxu3 %v2298_v49  ;;  %v1669_v49 = vld [vmem:[#allocation7 + $0x28] sm:$0xff] }
  0xce   :  { %1619 = vmatpush.bf16.msra.mxu2 %v2426_v51  ;;  %v1686_v51 = vld [vmem:[#allocation7 + $0xb0] sm:$0xff] }
  0xcf   :  { %1634 = vmatpush.bf16.msra.mxu0 %v2538_v9  ;;  %v1329_v35 = vpop.f32.mrf.mxu0  ;;  %v1681_v9 = vld [vmem:[#allocation7 + $0x88] sm:$0xff] }
  0xd0   :  { %1593 = vmatpush.bf16.msrb.mxu1 %v2138_v5  ;;  %v1343_v47 = vpop.f32.mrf.mxu1  ;;  %v1330_v48 = vadd.f32 %v1329_v35, %v1316_v43  ;;  %v1359_v0 = vpop.f32.mrf.mxu2  ;;  %v1702_v43 = vld [vmem:[#allocation7 + $0x130] sm:$0xff] }
  0xd1   :  { %1606 = vmatpush.bf16.msra.mxu3 %v2282_v3 }
  0xd2   :  { %1620 = vmatpush.bf16.msra.mxu2 %v2410_v4  ;;  %v1665_v4 = vld [vmem:[#allocation7 + $0x8] sm:$0xff] }
  0xd3   :  { %1594 = vmatmul.bf16.vlgmr.msrb.gmra.mxu1 %v3013_v54  ;;  %1635 = vmatpush.bf16.msra.mxu0 %v2522_v20  ;;  %v1693_v54 = vld [vmem:[#allocation7 + $0xe8] sm:$0xff] }
  0xd4   :  { %1649 = vmatpush.bf16.msra.mxu1 %v2650_v12  ;;  %v1680_v12 = vld [vmem:[#allocation7 + $0x80] sm:$0xff] }
  0xd5   :  { %1607 = vmatpush.bf16.msra.mxu3 %v2266_v16 }
  0xd6   :  { %1621 = vmatpush.bf16.msra.mxu2 %v2394_v17  ;;  %1636 = vmatmul.bf16.vlgmr.msra.gmra.mxu0 %v3031_v42  ;;  %v1690_v42 = vld [vmem:[#allocation7 + $0xd0] sm:$0xff] }
  0xd7   :  { %v1331_v59 = vpop.f32.mrf.mxu0  ;;  %v1371_v1 = vpop.f32.mrf.mxu3 }
  0xd8   :  { %1751 = vmatpush.msrb.mxu1 %v1695_v23  ;;  %1608 = vmatmul.bf16.vlgmr.msra.gmra.mxu3 %v3017_v60  ;;  %v1691_v60 = vld [vmem:[#allocation7 + $0xd8] sm:$0xff]  ;;  %v1332_v3 = vadd.f32 %v1331_v59, %v1318_v62  ;;  %v1345_v5 = vpop.f32.mrf.mxu1  ;;  %v1726_v59 = vld [vmem:[#allocation7 + $0x1f0] sm:$0xff] }
  0xd9   :  { %1728 = vmatpush.msrb.mxu3 %v1679_v19  ;;  %1622 = vmatmul.bf16.vlgmr.msra.gmra.mxu2 %v3029_v37  ;;  %v1673_v37 = vld [vmem:[#allocation7 + $0x48] sm:$0xff]  ;;  %v1711_v23 = vld [vmem:[#allocation7 + $0x178] sm:$0xff] }
  0xda   :  { %1752 = vmatpush.msrb.mxu1 %v1694_v58  ;;  %v1346_v11 = vadd.f32 %v1345_v5, %v1332_v3  ;;  %v1710_v58 = vld [vmem:[#allocation7 + $0x170] sm:$0xff]  ;;  %1774 = vmatpush.msrb.mxu2 %v1711_v23  ;;  %v1721_v5 = vld [vmem:[#allocation7 + $0x1c8] sm:$0xff]  ;;  %v1715_v23 = vld [vmem:[#allocation7 + $0x198] sm:$0xff] }
  0xdb   :  { %1729 = vmatpush.msrb.mxu3 %v1678_v22  ;;  %v1722_v3 = vld [vmem:[#allocation7 + $0x1d0] sm:$0xff] }
  0xdc   :  { %1753 = vmatpush.msrb.mxu1 %v1693_v54  ;;  %v1360_v13 = vadd.f32 %v1359_v0, %v1346_v11  ;;  %v1385_v14 = vpop.f32.mrf.mxu2  ;;  %1775 = vmatpush.msrb.mxu2 %v1710_v58  ;;  %v1708_v54 = vld [vmem:[#allocation7 + $0x160] sm:$0xff]  ;;  %v1723_v0 = vld [vmem:[#allocation7 + $0x1d8] sm:$0xff] }
  0xdd   :  { %1730 = vmatpush.msrb.mxu3 %v1677_v24  ;;  %v1386_v20 = vadd.f32 %v1385_v14, %v1371_v1  ;;  %v1718_v14 = vld [vmem:[#allocation7 + $0x1b0] sm:$0xff] }
  0xde   :  { %1754 = vmatpush.msrb.mxu1 %v1692_v30  ;;  %v1660_v16 = vmax.f32 %v1360_v13, 0.0  ;;  %1776 = vmatpush.msrb.mxu2 %v1709_v26 }
  0xdf   :  { %1731 = vmatpush.msrb.mxu3 %v1676_v25  ;;  %v1373_v15 = vpop.f32.mrf.mxu3 }
  0xe0   :  { %1755 = vmatpush.msrb.mxu1 %v1691_v60  ;;  %1777 = vmatpush.msrb.mxu2 %v1708_v54  ;;  %v1706_v60 = vld [vmem:[#allocation7 + $0x150] sm:$0xff] }
  0xe1   :  { %1732 = vmatpush.msrb.mxu3 %v1675_v27  ;;  %v1714_v54 = vld [vmem:[#allocation7 + $0x190] sm:$0xff] }
  0xe2   :  { %1756 = vmatpush.msrb.mxu1 %v1690_v42  ;;  %v1705_v42 = vld [vmem:[#allocation7 + $0x148] sm:$0xff] }
  0xe3   :  { %1733 = vmatpush.msrb.mxu3 %v1674_v32  ;;  %2654 = vmatmul.msk.bf16.vlgmr.msra.gmra.mxu1 %vm1260_vm0, %v3025_v50  ;;  %v1344_v50 = vadd.f32 %v1343_v47, %v1330_v48  ;;  %v1707_v32 = vld [vmem:[#allocation7 + $0x158] sm:$0xff]  ;;  %v1700_v48 = vld [vmem:[#allocation7 + $0x120] sm:$0xff] }
  0xe4   :  { %1757 = vmatpush.msrb.mxu1 %v1689_v36  ;;  %v1387_v19 = vpop.f32.mrf.mxu2  ;;  %1778 = vmatpush.msrb.mxu2 %v1707_v32  ;;  %v1704_v36 = vld [vmem:[#allocation7 + $0x140] sm:$0xff] }
  0xe5   :  { %1734 = vmatpush.msrb.mxu3 %v1673_v37  ;;  %v1358_v2 = vadd.f32 %v1357_v39, %v1344_v50  ;;  %v1388_v29 = vadd.f32 %v1387_v19, %v1373_v15  ;;  %v1712_v32 = vld [vmem:[#allocation7 + $0x180] sm:$0xff] }
  0xe6   :  { %1758 = vmatpush.msrb.mxu1 %v1688_v40  ;;  %1779 = vmatpush.msrb.mxu2 %v1706_v60 }
  0xe7   :  { %1735 = vmatpush.msrb.mxu3 %v1672_v34  ;;  %v1656_v10 = vmax.f32 %v1358_v2, 0.0 }
  0xe8   :  { %1759 = vmatpush.msrb.mxu1 %v1687_v41  ;;  %1780 = vmatpush.msrb.mxu2 %v1705_v42  ;;  %v1703_v41 = vld [vmem:[#allocation7 + $0x138] sm:$0xff] }
  0xe9   :  { %1736 = vmatpush.msrb.mxu3 %v1671_v38 }
  0xea   :  { %1760 = vmatpush.msrb.mxu1 %v1686_v51  ;;  %1781 = vmatpush.msrb.mxu2 %v1704_v36  ;;  %v1699_v51 = vld [vmem:[#allocation7 + $0x118] sm:$0xff] }
  0xeb   :  { %1737 = vmatpush.msrb.mxu3 %v1670_v45  ;;  %v1701_v45 = vld [vmem:[#allocation7 + $0x128] sm:$0xff] }
  0xec   :  { %1761 = vmatpush.msrb.mxu1 %v1685_v55  ;;  %1782 = vmatpush.msrb.mxu2 %v1703_v41  ;;  %v1696_v55 = vld [vmem:[#allocation7 + $0x100] sm:$0xff] }
  0xed   :  { %1738 = vmatpush.msrb.mxu3 %v1669_v49 }
  0xee   :  { %1762 = vmatpush.msrb.mxu1 %v1684_v57  ;;  %1783 = vmatpush.msrb.mxu2 %v1702_v43  ;;  %v1727_v57 = vld [vmem:[#allocation7 + $0x1f8] sm:$0xff] }
  0xef   :  { %1739 = vmatpush.msrb.mxu3 %v1668_v53  ;;  %v1399_v17 = vpop.f32.mrf.mxu0  ;;  %v1697_v53 = vld [vmem:[#allocation7 + $0x108] sm:$0xff]  ;;  %1797 = vmatpush.msrb.mxu0 %v1727_v57 }
  0xf0   :  { %1763 = vmatpush.msrb.mxu1 %v1683_v61  ;;  %v1413_v21 = vpop.f32.mrf.mxu1  ;;  %v1400_v22 = vadd.f32 %v1399_v17, %v1386_v20  ;;  %1784 = vmatpush.msrb.mxu2 %v1701_v45  ;;  %v1725_v61 = vld [vmem:[#allocation7 + $0x1e8] sm:$0xff]  ;;  %v1716_v20 = vld [vmem:[#allocation7 + $0x1a0] sm:$0xff] }
  0xf1   :  { %1740 = vmatpush.msrb.mxu3 %v1667_v56  ;;  %1798 = vmatpush.msrb.mxu0 %v1726_v59  ;;  %v1717_v17 = vld [vmem:[#allocation7 + $0x1a8] sm:$0xff] }
  0xf2   :  { %1764 = vmatpush.msrb.mxu1 %v1682_v6  ;;  %v1414_v25 = vadd.f32 %v1413_v21, %v1400_v22  ;;  %1785 = vmatpush.msrb.mxu2 %v1700_v48  ;;  %v1720_v6 = vld [vmem:[#allocation7 + $0x1c0] sm:$0xff] }
  0xf3   :  { %1741 = vmatpush.msrb.mxu3 %v1666_v63  ;;  %1799 = vmatpush.msrb.mxu0 %v1725_v61  ;;  %v1724_v63 = vld [vmem:[#allocation7 + $0x1e0] sm:$0xff] }
  0xf4   :  { %1765 = vmatpush.msrb.mxu1 %v1681_v9  ;;  %1786 = vmatpush.msrb.mxu2 %v1699_v51 }
  0xf5   :  { %1742 = vmatpush.msrb.mxu3 %v1665_v4  ;;  %1800 = vmatpush.msrb.mxu0 %v1724_v63 }
  0xf6   :  { %1766 = vmatpush.msrb.mxu1 %v1680_v12  ;;  %1787 = vmatpush.msrb.mxu2 %v1698_v52  ;;  %v1719_v12 = vld [vmem:[#allocation7 + $0x1b8] sm:$0xff] }
  0xf7   :  { %1743 = vmatpush.msrb.mxu3 %v1664_v7  ;;  %v1427_v18 = vpop.f32.mrf.mxu3  ;;  %v1401_v27 = vpop.f32.mrf.mxu0  ;;  %1801 = vmatpush.msrb.mxu0 %v1723_v0 }
  0xf8   :  { %1744 = vmatmul.f32.vlgmr.msrb.gmra.mxu3 %v1656_v10  ;;  %v1428_v30 = vadd.f32 %v1427_v18, %v1414_v25  ;;  %v1402_v31 = vadd.f32 %v1401_v27, %v1388_v29  ;;  %v1415_v8 = vpop.f32.mrf.mxu1  ;;  %1788 = vmatpush.msrb.mxu2 %v1697_v53  ;;  %v1713_v29 = vld [vmem:[#allocation7 + $0x188] sm:$0xff] }
  0xf9   :  { %1802 = vmatpush.msrb.mxu0 %v1722_v3 }
  0xfa   :  { %v1416_v34 = vadd.f32 %v1415_v8, %v1402_v31  ;;  %1789 = vmatpush.msrb.mxu2 %v1696_v55 }
  0xfb   :  { %1803 = vmatpush.msrb.mxu0 %v1721_v5 }
  0xfc   :  { %v1441_v28 = vpop.f32.mrf.mxu2 }
  0xfd   :  { %v1442_v37 = vadd.f32 %v1441_v28, %v1428_v30  ;;  %1804 = vmatpush.msrb.mxu0 %v1720_v6 }
  0xff   :  { %v1429_v24 = vpop.f32.mrf.mxu3  ;;  %1805 = vmatpush.msrb.mxu0 %v1719_v12 }
 0x100   :  { %1747 = vmatmul.f32.gmra.mxu3 %v1660_v16  ;;  %v1430_v38 = vadd.f32 %v1429_v24, %v1416_v34 }
 0x101   :  { %1806 = vmatpush.msrb.mxu0 %v1718_v14 }
 0x103   :  { %1807 = vmatpush.msrb.mxu0 %v1717_v17 }
 0x104   :  { %v1443_v40 = vpop.f32.mrf.mxu2 }
 0x105   :  { %v1444_v44 = vadd.f32 %v1443_v40, %v1430_v38  ;;  %1808 = vmatpush.msrb.mxu0 %v1716_v20 }
 0x107   :  { %v1455_v33 = vpop.f32.mrf.mxu3  ;;  %1809 = vmatpush.msrb.mxu0 %v1715_v23 }
 0x108   :  { %v1456_v35 = vadd.f32 %v1455_v33, %v1442_v37 }
 0x109   :  { %1810 = vmatpush.msrb.mxu0 %v1714_v54 }
 0x10a   :  { %v1657_v39 = vmax.f32 %v1456_v35, 0.0 }
 0x10b   :  { %1811 = vmatpush.msrb.mxu0 %v1713_v29 }
 0x10c   :  { %1767 = vmatmul.f32.vlgmr.msrb.gmra.mxu1 %v1657_v39 }
 0x10d   :  { %1812 = vmatpush.msrb.mxu0 %v1712_v32 }
 0x10f   :  { %v1457_v46 = vpop.f32.mrf.mxu3  ;;  %v1497_v50 = vpop.f32.mrf.mxu0 }
 0x110   :  { %v1458_v47 = vadd.f32 %v1457_v46, %v1444_v44  ;;  %v1469_v56 = vpop.f32.mrf.mxu1 }
 0x112   :  { %v1661_v49 = vmax.f32 %v1458_v47, 0.0 }
 0x114   :  { %1770 = vmatmul.f32.gmra.mxu1 %v1661_v49 }
 0x117   :  { %v1499_v1 = vpop.f32.mrf.mxu0 }
 0x118   :  { %v1471_v2 = vpop.f32.mrf.mxu1 }
 0x11b   :  { %v1483_v62 = vpop.f32.mrf.mxu3 }
 0x11c   :  { %v1484_v4 = vadd.f32 %v1483_v62, %v1469_v56  ;;  %v1511_v7 = vpop.f32.mrf.mxu2 }
 0x11e   :  { %v1498_v10 = vadd.f32 %v1497_v50, %v1484_v4 }
 0x11f   :  { %v1553_v11 = vpop.f32.mrf.mxu0 }
 0x120   :  { %v1512_v15 = vadd.f32 %v1511_v7, %v1498_v10 }
 0x123   :  { %v1485_v9 = vpop.f32.mrf.mxu3 }
 0x124   :  { %v1486_v16 = vadd.f32 %v1485_v9, %v1471_v2  ;;  %v1513_v58 = vpop.f32.mrf.mxu2  ;;  %v1820_v2 = vlaneseq }
 0x126   :  { %v1500_v21 = vadd.f32 %v1499_v1, %v1486_v16  ;;  %v1821_v5 = vand.u32 127, %v1820_v2 }
 0x127   :  { %v1555_v25 = vpop.f32.mrf.mxu0 }
 0x128   :  { %v1514_v27 = vadd.f32 %v1513_v58, %v1500_v21  ;;  %vm1822_vm1 = vcmp.lt.s32.totalorder %v1821_v5, 10 }
 0x130   :  { %v1525_v13 = vpop.f32.mrf.mxu1 }
 0x131   :  { %v1526_v18 = vadd.f32 %v1525_v13, %v1512_v15 }
 0x133   :  { %v1581_v42 = vpop.f32.mrf.mxu0 }
 0x138   :  { %v1527_v26 = vpop.f32.mrf.mxu1 }
 0x139   :  { %v1528_v30 = vadd.f32 %v1527_v26, %v1514_v27 }
 0x13b   :  { %v1539_v19 = vpop.f32.mrf.mxu3  ;;  %v1583_v36 = vpop.f32.mrf.mxu0 }
 0x13c   :  { %v1540_v22 = vadd.f32 %v1539_v19, %v1526_v18  ;;  %v1567_v37 = vpop.f32.mrf.mxu2 }
 0x13d   :  { %v1582_v38 = vadd.f32 %v1581_v42, %v1567_v37 }
 0x13e   :  { %v1554_v24 = vadd.f32 %v1553_v11, %v1540_v22 }
 0x140   :  { %v1658_v28 = vmax.f32 %v1554_v24, 0.0 }
 0x142   :  { %1790 = vmatmul.f32.vlgmr.msrb.gmra.mxu2 %v1658_v28 }
 0x143   :  { %v1541_v31 = vpop.f32.mrf.mxu3 }
 0x144   :  { %v1542_v60 = vadd.f32 %v1541_v31, %v1528_v30  ;;  %v1569_v35 = vpop.f32.mrf.mxu2 }
 0x145   :  { %v1584_v47 = vadd.f32 %v1583_v36, %v1569_v35 }
 0x146   :  { %v1556_v8 = vadd.f32 %v1555_v25, %v1542_v60 }
 0x148   :  { %v1662_v33 = vmax.f32 %v1556_v8, 0.0 }
 0x14a   :  { %1793 = vmatmul.f32.gmra.mxu2 %v1662_v33 }
 0x150   :  { %v1595_v34 = vpop.f32.mrf.mxu1 }
 0x151   :  { %v1596_v39 = vadd.f32 %v1595_v34, %v1582_v38 }
 0x153   :  { %v1637_v45 = vpop.f32.mrf.mxu0 }
 0x158   :  { %v1597_v40 = vpop.f32.mrf.mxu1 }
 0x159   :  { %v1598_v49 = vadd.f32 %v1597_v40, %v1584_v47 }
 0x15b   :  { %v1609_v41 = vpop.f32.mrf.mxu3  ;;  %v1639_v59 = vpop.f32.mrf.mxu0 }
 0x15c   :  { %v1610_v43 = vadd.f32 %v1609_v41, %v1596_v39  ;;  %v1623_v44 = vpop.f32.mrf.mxu2 }
 0x15e   :  { %v1624_v46 = vadd.f32 %v1623_v44, %v1610_v43 }
 0x160   :  { %v1638_v48 = vadd.f32 %v1637_v45, %v1624_v46  ;;  %v1651_v51 = vpop.f32.mrf.mxu1 }
 0x162   :  { %v1652_v52 = vadd.f32 %v1651_v51, %v1638_v48 }
 0x163   :  { %v1611_v53 = vpop.f32.mrf.mxu3 }
 0x164   :  { %v1612_v55 = vadd.f32 %v1611_v53, %v1598_v49  ;;  %v1659_v50 = vmax.f32 %v1652_v52, 0.0  ;;  %v1625_v56 = vpop.f32.mrf.mxu2 }
 0x166   :  { %v1626_v57 = vadd.f32 %v1625_v56, %v1612_v55  ;;  %1813 = vmatmul.f32.vlgmr.msrb.gmra.mxu0 %v1659_v50 }
 0x168   :  { %v1640_v61 = vadd.f32 %v1639_v59, %v1626_v57  ;;  %v1653_v62 = vpop.f32.mrf.mxu1 }
 0x16a   :  { %v1654_v63 = vadd.f32 %v1653_v62, %v1640_v61 }
 0x16c   :  { %v1663_v0 = vmax.f32 %v1654_v63, 0.0 }
 0x16e   :  { %1816 = vmatmul.f32.gmra.mxu0 %v1663_v0 }
 0x17b   :  { %v1745_v3 = vpop.f32.mrf.mxu3 }
 0x183   :  { %v1748_v13 = vpop.f32.mrf.mxu3 }
 0x189   :  { %v1768_v1 = vpop.f32.mrf.mxu1 }
 0x18a   :  { %v1769_v6 = vadd.f32 %v1768_v1, %v1745_v3 }
 0x191   :  { %v1771_v11 = vpop.f32.mrf.mxu1 }
 0x192   :  { %v1772_v15 = vadd.f32 %v1771_v11, %v1748_v13 }
 0x1c5   :  { %v1791_v4 = vpop.f32.mrf.mxu2 }
 0x1c6   :  { %v1792_v7 = vadd.f32 %v1791_v4, %v1769_v6 }
 0x1cd   :  { %v1794_v14 = vpop.f32.mrf.mxu2 }
 0x1ce   :  { %v1795_v16 = vadd.f32 %v1794_v14, %v1772_v15 }
 0x1e3   :  { %v1814_v9 = vpop.f32.mrf.mxu0 }
 0x1e4   :  { %v1815_v10 = vadd.f32 %v1814_v9, %v1792_v7 }
 0x1e6   :  { %v1823_v12 = vsel %vm1822_vm1, %v1815_v10, -inf }
 0x1e7   :  { %1825 = vmax.xlane.f32.xlu0 %v1823_v12 }
 0x1eb   :  { %v1817_v17 = vpop.f32.mrf.mxu0 }
 0x1ec   :  { %v1818_v18 = vadd.f32 %v1817_v17, %v1795_v16 }
 0x1ee   :  { %v1824_v19 = vsel %vm1822_vm1, %v1818_v18, -inf }
 0x1ef   :  { %1827 = vmax.xlane.f32.xlu0 %v1824_v19 }
 0x25a   :  { %v1826_v20 = vpop.xlane.xlu0 %1825 }
 0x25b   :  { %v1829_v21 = vsub.f32 %v1823_v12, %v1826_v20 }
 0x25d   :  { %v1831_v22 = vmul.f32 1.442695, %v1829_v21 }
 0x25f   :  { %2861 = vpow2.f32 %v1831_v22 }
 0x262   :  { %v1828_v23 = vpop.xlane.xlu0 %1827 }
 0x263   :  { %v1830_v58 = vsub.f32 %v1824_v19, %v1828_v23 }
 0x265   :  { %v2862_v24 = vpop.eup %2861  ;;  %v1833_v25 = vmul.f32 1.442695, %v1830_v58 }
 0x266   :  { %1835 = vadd.xlane.f32.xlu1 %v2862_v24 }
 0x267   :  { %2863 = vpow2.f32 %v1833_v25 }
 0x26d   :  { %v2864_v26 = vpop.eup %2863 }
 0x26e   :  { %1837 = vadd.xlane.f32.xlu1 %v2864_v26 }
 0x2d9   :  { %v1836_v54 = vpop.xlane.xlu1 %1835 }
 0x2da   :  { %2865 = vlog2.f32 %v1836_v54 }
 0x2e0   :  { %v2866_v27 = vpop.eup %2865 }
 0x2e1   :  { %v1840_v28 = vmul.f32 0.6931472, %v2866_v27  ;;  %v1838_v29 = vpop.xlane.xlu1 %1837 }
 0x2e2   :  { %2867 = vlog2.f32 %v1838_v29 }
 0x2e3   :  { %v1843_v30 = vsub.f32 %v1829_v21, %v1840_v28 }
 0x2e5   :  { %1845 = vst [vmem:[#allocation8] sm:$0xff] %v1843_v30 }
 0x2e8   :  { %v2868_v31 = vpop.eup %2867 }
 0x2e9   :  { %v1842_v32 = vmul.f32 0.6931472, %v2868_v31 }
 0x2eb   :  { %v1844_v60 = vsub.f32 %v1830_v58, %v1842_v32 }
 0x2ed   :  { %1846 = vst [vmem:[#allocation8 + $0x8] sm:$0xff] %v1844_v60 }
 0x2ee   :  { %1859 = dma.vmem_to_hbm [thread:$0]  %s1852_s4, 256, %s1854_s7, [#allocation4], %s2978_s30, %s2978_s30, %s2979_s0  }
 0x2ef   :  { %2969 = dma.done.wait [#allocation4], 256  }
 0x2f0   :  { %2970 = vsyncadd [#allocation4], 4294967040 }
 0x2f1   :  { %1864 = vsyncpa [#allocation3], 1 }
 0x2f2   :  { %1865 = vsyncpa [#allocation6], 1 }
 0x2f3   :  { %1866 = vsyncpa [#allocation4], 1 }

</bundles_post_ra>
